<compile_context>
chip_gen: v6e
topology: v6e:2x2x1
jax: 0.10.0
libtpu: 0.0.40
codegen_flags: <defaults>
</compile_context>

<pallas_src>
import math

import jax
import jax.numpy as jnp
from jax.experimental import pallas as pl
from jax.experimental.pallas import tpu as pltpu


D_INPUT = 64          # d_input_dim (small, for the demo)
H1, H2, H3 = 1024, 512, 256
DROP_P = 0.3
LEAK = 0.2


def _leaky_relu(h):
    return jnp.where(h > 0, h, LEAK * h)


def discriminator_kernel(x_ref,
                         m1_ref, m2_ref, m3_ref,
                         w1_ref, b1_ref,
                         w2_ref, b2_ref,
                         w3_ref, b3_ref,
                         w4_ref, b4_ref,
                         out_ref):
    x = x_ref[...].astype(jnp.float32)

    # fc1 + leaky_relu + dropout (bf16 matmul inputs, f32 accumulation)
    h = jnp.dot(x.astype(jnp.bfloat16), w1_ref[...],
                preferred_element_type=jnp.float32) + b1_ref[...]
    h = _leaky_relu(h) * m1_ref[...]

    # fc2 + leaky_relu + dropout
    h = jnp.dot(h.astype(jnp.bfloat16), w2_ref[...],
                preferred_element_type=jnp.float32) + b2_ref[...]
    h = _leaky_relu(h) * m2_ref[...]

    # fc3 + leaky_relu + dropout
    h = jnp.dot(h.astype(jnp.bfloat16), w3_ref[...],
                preferred_element_type=jnp.float32) + b3_ref[...]
    h = _leaky_relu(h) * m3_ref[...]

    # fc4 (out_features == 1): broadcast-multiply + lane reduction, then sigmoid.
    logits = jnp.sum(h * w4_ref[...], axis=-1, keepdims=True) + b4_ref[...]
    out_ref[...] = jax.nn.sigmoid(logits).astype(out_ref.dtype)


def _pick_tm(B):
    for tm in (256, 128):
        if B % tm == 0:
            return tm
    return B  # small batch: single tile covering the whole batch


def discriminator_forward(x, params, dropout_key):
    """x: [B, D_INPUT] f32.  params: dict of weights/biases.  dropout_key: PRNGKey."""
    B, D = x.shape
    x = x.astype(jnp.float32)

    # Host-side dropout masks (values are 0 or 1/(1-p)), one row per example.
    inv_keep = 1.0 / (1.0 - DROP_P)
    k1, k2, k3 = jax.random.split(dropout_key, 3)
    m1 = jax.random.bernoulli(k1, 1.0 - DROP_P, (B, H1)).astype(jnp.float32) * inv_keep
    m2 = jax.random.bernoulli(k2, 1.0 - DROP_P, (B, H2)).astype(jnp.float32) * inv_keep
    m3 = jax.random.bernoulli(k3, 1.0 - DROP_P, (B, H3)).astype(jnp.float32) * inv_keep

    TM = _pick_tm(B)
    grid = (B // TM,)

    batch_spec = lambda i: (i, 0)
    const_spec = lambda i: (0, 0)   # weights/biases: VMEM-resident across tiles

    return pl.pallas_call(
        discriminator_kernel,
        out_shape=jax.ShapeDtypeStruct((B, 1), jnp.float32),
        grid=grid,
        in_specs=[
            pl.BlockSpec((TM, D), batch_spec),        # x
            pl.BlockSpec((TM, H1), batch_spec),       # dropout mask 1
            pl.BlockSpec((TM, H2), batch_spec),       # dropout mask 2
            pl.BlockSpec((TM, H3), batch_spec),       # dropout mask 3
            pl.BlockSpec((D, H1), const_spec),        # W1 (bf16)
            pl.BlockSpec((1, H1), const_spec),        # b1
            pl.BlockSpec((H1, H2), const_spec),       # W2 (bf16)
            pl.BlockSpec((1, H2), const_spec),        # b2
            pl.BlockSpec((H2, H3), const_spec),       # W3 (bf16)
            pl.BlockSpec((1, H3), const_spec),        # b3
            pl.BlockSpec((1, H3), const_spec),        # W4 as [1, H3] (f32)
            pl.BlockSpec((1, 1), const_spec),         # b4
        ],
        out_specs=pl.BlockSpec((TM, 1), batch_spec),
        compiler_params=pltpu.CompilerParams(
            dimension_semantics=("parallel",)),
    )(x, m1, m2, m3,
      params["w1"], params["b1"],
      params["w2"], params["b2"],
      params["w3"], params["b3"],
      params["w4"], params["b4"])


def init_params(key, d_input_dim):
    """Deterministic init mimicking nn.Linear default (uniform +-1/sqrt(fan_in))."""
    dims = [(d_input_dim, H1), (H1, H2), (H2, H3), (H3, 1)]
    params = {}
    keys = jax.random.split(key, 8)
    for i, (fin, fout) in enumerate(dims):
        bound = 1.0 / math.sqrt(fin)
        w = jax.random.uniform(keys[2 * i], (fin, fout), jnp.float32, -bound, bound)
        b = jax.random.uniform(keys[2 * i + 1], (1, fout), jnp.float32, -bound, bound)
        if i == 3:
            # fc4 weight stored as [1, H3] (f32) for the lane-reduction epilogue.
            params[f"w{i + 1}"] = w.T
        else:
            # fc1-fc3 weights stored as [in, out] bf16 (matmul fast path).
            params[f"w{i + 1}"] = w.astype(jnp.bfloat16)
        params[f"b{i + 1}"] = b
    return params


if __name__ == "__main__":
    key = jax.random.PRNGKey(0)
    pkey, xkey, dkey = jax.random.split(key, 3)

    params = init_params(pkey, D_INPUT)
    batch = 8
    x = jax.random.normal(xkey, (batch, D_INPUT), dtype=jnp.float32)

    out = discriminator_forward(x, params, dkey)
    out = jax.block_until_ready(out)

    assert out.shape == (batch, 1)
    assert bool(jnp.all(jnp.isfinite(out)))
    assert bool(jnp.all((out >= 0.0) & (out <= 1.0)))
    print("KERNEL_OK")
</pallas_src>

<mosaic_0001>
module attributes {stable_mosaic.version = 11 : i64} {
  func.func @discriminator_kernel(%arg0: i32, %arg1: memref<8x64xf32, #tpu.memory_space<vmem>>, %arg2: memref<8x1024xf32, #tpu.memory_space<vmem>>, %arg3: memref<8x512xf32, #tpu.memory_space<vmem>>, %arg4: memref<8x256xf32, #tpu.memory_space<vmem>>, %arg5: memref<64x1024xbf16, #tpu.memory_space<vmem>>, %arg6: memref<1x1024xf32, #tpu.memory_space<vmem>>, %arg7: memref<1024x512xbf16, #tpu.memory_space<vmem>>, %arg8: memref<1x512xf32, #tpu.memory_space<vmem>>, %arg9: memref<512x256xbf16, #tpu.memory_space<vmem>>, %arg10: memref<1x256xf32, #tpu.memory_space<vmem>>, %arg11: memref<1x256xf32, #tpu.memory_space<vmem>>, %arg12: memref<1x1xf32, #tpu.memory_space<vmem>>, %arg13: memref<8x1xf32, #tpu.memory_space<vmem>>) attributes {dimension_semantics = [#tpu.dimension_semantics<parallel>], iteration_bounds = array<i64: 1>, scalar_prefetch = 0 : i64, scratch_operands = 0 : i64, tpu.core_type = #tpu.core_type<tc>, window_params = [{transform_indices = @transform_0, window_bounds = array<i64: 8, 64>}, {transform_indices = @transform_1, window_bounds = array<i64: 8, 1024>}, {transform_indices = @transform_2, window_bounds = array<i64: 8, 512>}, {transform_indices = @transform_3, window_bounds = array<i64: 8, 256>}, {pipeline_mode = #tpu.pipeline_mode<synchronous>, transform_indices = @transform_4, window_bounds = array<i64: 64, 1024>}, {pipeline_mode = #tpu.pipeline_mode<synchronous>, transform_indices = @transform_5, window_bounds = array<i64: 1, 1024>}, {pipeline_mode = #tpu.pipeline_mode<synchronous>, transform_indices = @transform_6, window_bounds = array<i64: 1024, 512>}, {pipeline_mode = #tpu.pipeline_mode<synchronous>, transform_indices = @transform_7, window_bounds = array<i64: 1, 512>}, {pipeline_mode = #tpu.pipeline_mode<synchronous>, transform_indices = @transform_8, window_bounds = array<i64: 512, 256>}, {pipeline_mode = #tpu.pipeline_mode<synchronous>, transform_indices = @transform_9, window_bounds = array<i64: 1, 256>}, {pipeline_mode = #tpu.pipeline_mode<synchronous>, transform_indices = @transform_10, window_bounds = array<i64: 1, 256>}, {pipeline_mode = #tpu.pipeline_mode<synchronous>, transform_indices = @transform_11, window_bounds = array<i64: 1, 1>}, {transform_indices = @transform_12, window_bounds = array<i64: 8, 1>}]} {
    %c0 = arith.constant 0 : index
    %c0_0 = arith.constant 0 : index
    %0 = vector.load %arg1[%c0, %c0_0] : memref<8x64xf32, #tpu.memory_space<vmem>>, vector<8x64xf32>
    %1 = arith.truncf %0 : vector<8x64xf32> to vector<8x64xbf16>
    %c0_1 = arith.constant 0 : index
    %c0_2 = arith.constant 0 : index
    %2 = vector.load %arg5[%c0_1, %c0_2] : memref<64x1024xbf16, #tpu.memory_space<vmem>>, vector<64x1024xbf16>
    %cst = arith.constant dense<0.000000e+00> : vector<8x1024xf32>
    %3 = tpu.matmul %1, %2, %cst {dimension_numbers = #tpu.dot_dimension_numbers<[1], [0], [0], [1], [0, 0, 1, 1], [], []>} : vector<8x64xbf16>, vector<64x1024xbf16>, vector<8x1024xf32> -> vector<8x1024xf32>
    %c0_3 = arith.constant 0 : index
    %c0_4 = arith.constant 0 : index
    %4 = vector.load %arg6[%c0_3, %c0_4] : memref<1x1024xf32, #tpu.memory_space<vmem>>, vector<1x1024xf32>
    %5 = vector.broadcast %4 : vector<1x1024xf32> to vector<8x1024xf32>
    %6 = arith.addf %3, %5 : vector<8x1024xf32>
    %cst_5 = arith.constant 0.000000e+00 : f32
    %7 = vector.broadcast %cst_5 : f32 to vector<8x1024xf32>
    %8 = arith.cmpf ogt, %6, %7 : vector<8x1024xf32>
    %cst_6 = arith.constant 2.000000e-01 : f32
    %9 = vector.broadcast %cst_6 : f32 to vector<8x1024xf32>
    %10 = arith.mulf %9, %6 : vector<8x1024xf32>
    %11 = arith.select %8, %6, %10 : vector<8x1024xi1>, vector<8x1024xf32>
    %c0_7 = arith.constant 0 : index
    %c0_8 = arith.constant 0 : index
    %12 = vector.load %arg2[%c0_7, %c0_8] : memref<8x1024xf32, #tpu.memory_space<vmem>>, vector<8x1024xf32>
    %13 = arith.mulf %11, %12 : vector<8x1024xf32>
    %14 = arith.truncf %13 : vector<8x1024xf32> to vector<8x1024xbf16>
    %c0_9 = arith.constant 0 : index
    %c0_10 = arith.constant 0 : index
    %15 = vector.load %arg7[%c0_9, %c0_10] : memref<1024x512xbf16, #tpu.memory_space<vmem>>, vector<1024x512xbf16>
    %cst_11 = arith.constant dense<0.000000e+00> : vector<8x512xf32>
    %16 = tpu.matmul %14, %15, %cst_11 {dimension_numbers = #tpu.dot_dimension_numbers<[1], [0], [0], [1], [0, 0, 1, 1], [], []>} : vector<8x1024xbf16>, vector<1024x512xbf16>, vector<8x512xf32> -> vector<8x512xf32>
    %c0_12 = arith.constant 0 : index
    %c0_13 = arith.constant 0 : index
    %17 = vector.load %arg8[%c0_12, %c0_13] : memref<1x512xf32, #tpu.memory_space<vmem>>, vector<1x512xf32>
    %18 = vector.broadcast %17 : vector<1x512xf32> to vector<8x512xf32>
    %19 = arith.addf %16, %18 : vector<8x512xf32>
    %cst_14 = arith.constant 0.000000e+00 : f32
    %20 = vector.broadcast %cst_14 : f32 to vector<8x512xf32>
    %21 = arith.cmpf ogt, %19, %20 : vector<8x512xf32>
    %cst_15 = arith.constant 2.000000e-01 : f32
    %22 = vector.broadcast %cst_15 : f32 to vector<8x512xf32>
    %23 = arith.mulf %22, %19 : vector<8x512xf32>
    %24 = arith.select %21, %19, %23 : vector<8x512xi1>, vector<8x512xf32>
    %c0_16 = arith.constant 0 : index
    %c0_17 = arith.constant 0 : index
    %25 = vector.load %arg3[%c0_16, %c0_17] : memref<8x512xf32, #tpu.memory_space<vmem>>, vector<8x512xf32>
    %26 = arith.mulf %24, %25 : vector<8x512xf32>
    %27 = arith.truncf %26 : vector<8x512xf32> to vector<8x512xbf16>
    %c0_18 = arith.constant 0 : index
    %c0_19 = arith.constant 0 : index
    %28 = vector.load %arg9[%c0_18, %c0_19] : memref<512x256xbf16, #tpu.memory_space<vmem>>, vector<512x256xbf16>
    %cst_20 = arith.constant dense<0.000000e+00> : vector<8x256xf32>
    %29 = tpu.matmul %27, %28, %cst_20 {dimension_numbers = #tpu.dot_dimension_numbers<[1], [0], [0], [1], [0, 0, 1, 1], [], []>} : vector<8x512xbf16>, vector<512x256xbf16>, vector<8x256xf32> -> vector<8x256xf32>
    %c0_21 = arith.constant 0 : index
    %c0_22 = arith.constant 0 : index
    %30 = vector.load %arg10[%c0_21, %c0_22] : memref<1x256xf32, #tpu.memory_space<vmem>>, vector<1x256xf32>
    %31 = vector.broadcast %30 : vector<1x256xf32> to vector<8x256xf32>
    %32 = arith.addf %29, %31 : vector<8x256xf32>
    %cst_23 = arith.constant 0.000000e+00 : f32
    %33 = vector.broadcast %cst_23 : f32 to vector<8x256xf32>
    %34 = arith.cmpf ogt, %32, %33 : vector<8x256xf32>
    %cst_24 = arith.constant 2.000000e-01 : f32
    %35 = vector.broadcast %cst_24 : f32 to vector<8x256xf32>
    %36 = arith.mulf %35, %32 : vector<8x256xf32>
    %37 = arith.select %34, %32, %36 : vector<8x256xi1>, vector<8x256xf32>
    %c0_25 = arith.constant 0 : index
    %c0_26 = arith.constant 0 : index
    %38 = vector.load %arg4[%c0_25, %c0_26] : memref<8x256xf32, #tpu.memory_space<vmem>>, vector<8x256xf32>
    %39 = arith.mulf %37, %38 : vector<8x256xf32>
    %c0_27 = arith.constant 0 : index
    %c0_28 = arith.constant 0 : index
    %40 = vector.load %arg11[%c0_27, %c0_28] : memref<1x256xf32, #tpu.memory_space<vmem>>, vector<1x256xf32>
    %41 = vector.broadcast %40 : vector<1x256xf32> to vector<8x256xf32>
    %42 = arith.mulf %39, %41 : vector<8x256xf32>
    %cst_29 = arith.constant dense<0.000000e+00> : vector<8xf32>
    %43 = vector.multi_reduction <add>, %42, %cst_29 [1] : vector<8x256xf32> to vector<8xf32>
    %44 = vector.shape_cast %43 : vector<8xf32> to vector<8x1xf32>
    %c0_30 = arith.constant 0 : index
    %c0_31 = arith.constant 0 : index
    %45 = vector.load %arg12[%c0_30, %c0_31] : memref<1x1xf32, #tpu.memory_space<vmem>>, vector<1x1xf32>
    %46 = vector.broadcast %45 : vector<1x1xf32> to vector<8x1xf32>
    %47 = arith.addf %44, %46 : vector<8x1xf32>
    %48 = arith.negf %47 : vector<8x1xf32>
    %49 = math.exp %48 : vector<8x1xf32>
    %cst_32 = arith.constant 1.000000e+00 : f32
    %50 = vector.broadcast %cst_32 : f32 to vector<8x1xf32>
    %51 = arith.addf %50, %49 : vector<8x1xf32>
    %52 = arith.divf %50, %51 : vector<8x1xf32>
    %c0_33 = arith.constant 0 : index
    %c0_34 = arith.constant 0 : index
    %53 = vector.load %arg13[%c0_33, %c0_34] : memref<8x1xf32, #tpu.memory_space<vmem>>, vector<8x1xf32>
    tpu.vector_store %arg13[%c0_33, %c0_34], %52 {strides = array<i32>} : memref<8x1xf32, #tpu.memory_space<vmem>>, vector<8x1xf32>,
    return
  }
  func.func @transform_0(%arg0: i32) -> (i32, i32) {
    %c0_i32 = arith.constant 0 : i32
    %c0_i32_0 = arith.constant 0 : i32
    return %arg0, %c0_i32 : i32, i32
  }
  func.func @transform_1(%arg0: i32) -> (i32, i32) {
    %c0_i32 = arith.constant 0 : i32
    %c0_i32_0 = arith.constant 0 : i32
    return %arg0, %c0_i32 : i32, i32
  }
  func.func @transform_2(%arg0: i32) -> (i32, i32) {
    %c0_i32 = arith.constant 0 : i32
    %c0_i32_0 = arith.constant 0 : i32
    return %arg0, %c0_i32 : i32, i32
  }
  func.func @transform_3(%arg0: i32) -> (i32, i32) {
    %c0_i32 = arith.constant 0 : i32
    %c0_i32_0 = arith.constant 0 : i32
    return %arg0, %c0_i32 : i32, i32
  }
  func.func @transform_4(%arg0: i32) -> (i32, i32) {
    %c0_i32 = arith.constant 0 : i32
    %c0_i32_0 = arith.constant 0 : i32
    %c0_i32_1 = arith.constant 0 : i32
    return %c0_i32, %c0_i32_0 : i32, i32
  }
  func.func @transform_5(%arg0: i32) -> (i32, i32) {
    %c0_i32 = arith.constant 0 : i32
    %c0_i32_0 = arith.constant 0 : i32
    %c0_i32_1 = arith.constant 0 : i32
    return %c0_i32, %c0_i32_0 : i32, i32
  }
  func.func @transform_6(%arg0: i32) -> (i32, i32) {
    %c0_i32 = arith.constant 0 : i32
    %c0_i32_0 = arith.constant 0 : i32
    %c0_i32_1 = arith.constant 0 : i32
    return %c0_i32, %c0_i32_0 : i32, i32
  }
  func.func @transform_7(%arg0: i32) -> (i32, i32) {
    %c0_i32 = arith.constant 0 : i32
    %c0_i32_0 = arith.constant 0 : i32
    %c0_i32_1 = arith.constant 0 : i32
    return %c0_i32, %c0_i32_0 : i32, i32
  }
  func.func @transform_8(%arg0: i32) -> (i32, i32) {
    %c0_i32 = arith.constant 0 : i32
    %c0_i32_0 = arith.constant 0 : i32
    %c0_i32_1 = arith.constant 0 : i32
    return %c0_i32, %c0_i32_0 : i32, i32
  }
  func.func @transform_9(%arg0: i32) -> (i32, i32) {
    %c0_i32 = arith.constant 0 : i32
    %c0_i32_0 = arith.constant 0 : i32
    %c0_i32_1 = arith.constant 0 : i32
    return %c0_i32, %c0_i32_0 : i32, i32
  }
  func.func @transform_10(%arg0: i32) -> (i32, i32) {
    %c0_i32 = arith.constant 0 : i32
    %c0_i32_0 = arith.constant 0 : i32
    %c0_i32_1 = arith.constant 0 : i32
    return %c0_i32, %c0_i32_0 : i32, i32
  }
  func.func @transform_11(%arg0: i32) -> (i32, i32) {
    %c0_i32 = arith.constant 0 : i32
    %c0_i32_0 = arith.constant 0 : i32
    %c0_i32_1 = arith.constant 0 : i32
    return %c0_i32, %c0_i32_0 : i32, i32
  }
  func.func @transform_12(%arg0: i32) -> (i32, i32) {
    %c0_i32 = arith.constant 0 : i32
    %c0_i32_0 = arith.constant 0 : i32
    return %arg0, %c0_i32 : i32, i32
  }
}

</mosaic_0001>

<bundles_post_ra>
// kernel: tpu_custom_call.1
= control target key start
LH: loop header
LB: loop body
LE: loop exit
PB: predicated region body
PF: predicated region fallthrough
CT: control target
= control target key end

     0   :  { %s4248_s0 = inlined_call_operand.hbm [shape: f32[8,64], index: 0, kind: input, shape index: {}]   ;;  %s4249_s1 = inlined_call_operand.hbm [shape: f32[8,1024], index: 1, kind: input, shape index: {}]   ;;  %s4250_s2 = inlined_call_operand.hbm [shape: f32[8,512], index: 2, kind: input, shape index: {}]   ;;  %s4251_s3 = inlined_call_operand.hbm [shape: f32[8,256], index: 3, kind: input, shape index: {}]   ;;  %s4252_s4 = inlined_call_operand.hbm [shape: bf16[64,1024], index: 4, kind: input, shape index: {}]   ;;  %s4253_s5 = inlined_call_operand.vmem [shape: f32[1,1024], index: 5, kind: input, shape index: {}]   ;;  %s4254_s6 = inlined_call_operand.hbm [shape: bf16[1024,512], index: 6, kind: input, shape index: {}]   ;;  %s4255_s7 = inlined_call_operand.vmem [shape: f32[1,512], index: 7, kind: input, shape index: {}]   ;;  %s4256_s8 = inlined_call_operand.hbm [shape: bf16[512,256], index: 8, kind: input, shape index: {}]   ;;  %s4257_s9 = inlined_call_operand.vmem [shape: f32[1,256], index: 9, kind: input, shape index: {}]   ;;  %s4258_s10 = inlined_call_operand.vmem [shape: f32[1,256], index: 10, kind: input, shape index: {}]   ;;  %s4259_s11 = inlined_call_operand.<no memory space> [shape: f32[1,1], index: 11, kind: input, shape index: {}]   ;;  %s4260_s12 = inlined_call_operand.vmem [shape: f32[8,1], index: 12, kind: output, shape index: {}]  }
   0x1   :  { %v17_v0 = vstv %s4259_s11 }
   0x2   :  { %18 = vst [vmem:[#allocation2] sm:$0x1] %v17_v0 }
   0x3   :  { %19 = vsyncpa [#allocation4], 0 }
   0x4   :  { %20 = vsyncpa [#allocation6], 0 }
   0x5   :  { %21 = vsyncpa [#allocation9], 0 }
   0x6   :  { %22 = vsyncpa [#allocation12], 0  ;;  %s4026_s23 = smov [#allocation5]   ;;  %s4027_s25 = smov [#allocation8]  }
   0x7   :  { %s39_s24 = sshll.u32 %s4026_s23, 4  ;;  %s59_s26 = sshll.u32 %s4027_s25, 4  ;;  %s40_s24 = int_to_ptr.vmem [resolvable:$true] %s39_s24  ;;  %s60_s26 = int_to_ptr.vmem [resolvable:$true] %s59_s26 }
   0x8   :  { %s3886_s27 = scalar_lea.vmem %s40_s24, 1024  ;;  %p3891_p1 = scmp.lt.s32.totalorder %s40_s24, %s40_s24 }
   0x9   :  { %p3887_p0 = scmp.ne.s32.totalorder %s40_s24, %s3886_s27  ;;  %p3892_p2 = scmp.lt.s32.totalorder %s3886_s27, %s3886_s27 }
   0xb   :  { %p3893_p3 = por %p3892_p2, %p3891_p1 }
   0xd   :  { %p3894_p4 = pnand %p3893_p3, %p3887_p0 }
   0xf   :  { %3897 = shalt.err (!%p3894_p4)
}
  0x10   :  { %42 = dma.hbm_to_vmem [thread:$0]  %s4249_s1, 1024, %s40_s24, [#allocation6]  }
  0x11   :  { %s3906_s29 = scalar_lea.vmem %s60_s26, 256  ;;  %p3911_p6 = scmp.lt.s32.totalorder %s60_s26, %s60_s26 }
  0x12   :  { %p3907_p5 = scmp.ne.s32.totalorder %s60_s26, %s3906_s29  ;;  %p3912_p7 = scmp.lt.s32.totalorder %s3906_s29, %s3906_s29 }
  0x14   :  { %p3913_p8 = por %p3912_p7, %p3911_p6 }
  0x16   :  { %p3914_p9 = pnand %p3913_p8, %p3907_p5 }
  0x18   :  { %3917 = shalt.err (!%p3914_p9)
}
  0x19   :  { %62 = dma.hbm_to_vmem [thread:$0]  %s4251_s3, 256, %s60_s26, [#allocation9]  }
  0x1a   :  { %s4028_s14 = smov [#allocation11]  }
  0x1b   :  { %s82_s15 = sshll.u32 %s4028_s14, 4  ;;  %s83_s15 = int_to_ptr.vmem [resolvable:$true] %s82_s15 }
  0x1c   :  { %s3926_s16 = scalar_lea.vmem %s83_s15, 32768  ;;  %p3931_p11 = scmp.lt.s32.totalorder %s83_s15, %s83_s15 }
  0x1d   :  { %p3927_p10 = scmp.ne.s32.totalorder %s83_s15, %s3926_s16  ;;  %p3932_p12 = scmp.lt.s32.totalorder %s3926_s16, %s3926_s16 }
  0x1f   :  { %p3933_p13 = por %p3932_p12, %p3931_p11 }
  0x21   :  { %p3934_p0 = pnand %p3933_p13, %p3927_p10 }
  0x23   :  { %3937 = shalt.err (!%p3934_p0)
}
  0x24   :  { %s4029_s1 = smov 256   ;;  %s4030_s17 = smov 16  }
  0x25   :  { %88 = dma.hbm_to_vmem [thread:$0]  %s4254_s6, 32768, %s83_s15, [#allocation12], %s4029_s1, %s4029_s1, %s4030_s17  }
  0x26   :  { %s4031_s20 = smov [#allocation3]   ;;  %s4032_s3 = smov [#allocation7]  }
  0x27   :  { %s29_s21 = sshll.u32 %s4031_s20, 4  ;;  %s49_s22 = sshll.u32 %s4032_s3, 4  ;;  %s30_s21 = int_to_ptr.vmem [resolvable:$true] %s29_s21  ;;  %s50_s22 = int_to_ptr.vmem [resolvable:$true] %s49_s22 }
  0x28   :  { %s3946_s23 = scalar_lea.vmem %s30_s21, 128  ;;  %p3951_p2 = scmp.lt.s32.totalorder %s30_s21, %s30_s21 }
  0x29   :  { %p3947_p1 = scmp.ne.s32.totalorder %s30_s21, %s3946_s23  ;;  %p3952_p3 = scmp.lt.s32.totalorder %s3946_s23, %s3946_s23 }
  0x2b   :  { %p3953_p4 = por %p3952_p3, %p3951_p2 }
  0x2d   :  { %p3954_p5 = pnand %p3953_p4, %p3947_p1 }
  0x2f   :  { %3957 = shalt.err (!%p3954_p5)
}
  0x30   :  { %32 = dma.hbm_to_vmem [thread:$0]  %s4248_s0, 128, %s30_s21, [#allocation4]  }
  0x31   :  { %s3966_s26 = scalar_lea.vmem %s50_s22, 512  ;;  %p3971_p7 = scmp.lt.s32.totalorder %s50_s22, %s50_s22 }
  0x32   :  { %p3967_p6 = scmp.ne.s32.totalorder %s50_s22, %s3966_s26  ;;  %p3972_p8 = scmp.lt.s32.totalorder %s3966_s26, %s3966_s26 }
  0x34   :  { %p3973_p9 = por %p3972_p8, %p3971_p7 }
  0x36   :  { %p3974_p10 = pnand %p3973_p9, %p3967_p6 }
  0x38   :  { %3977 = shalt.err (!%p3974_p10)
}
  0x39   :  { %52 = dma.hbm_to_vmem [thread:$0]  %s4250_s2, 512, %s50_s22, [#allocation6]  }
  0x3a   :  { %s4033_s28 = smov [#allocation10]  }
  0x3b   :  { %s68_s11 = sshll.u32 %s4033_s28, 4  ;;  %s69_s11 = int_to_ptr.vmem [resolvable:$true] %s68_s11 }
  0x3c   :  { %s3986_s29 = scalar_lea.vmem %s69_s11, 4096  ;;  %p3991_p12 = scmp.lt.s32.totalorder %s69_s11, %s69_s11 }
  0x3d   :  { %p3987_p11 = scmp.ne.s32.totalorder %s69_s11, %s3986_s29  ;;  %p3992_p13 = scmp.lt.s32.totalorder %s3986_s29, %s3986_s29 }
  0x3f   :  { %p3993_p0 = por %p3992_p13, %p3991_p12 }
  0x41   :  { %p3994_p1 = pnand %p3993_p0, %p3987_p11 }
  0x43   :  { %3997 = shalt.err (!%p3994_p1)
}
  0x44   :  { %s4034_s0 = smov 512   ;;  %s4035_s30 = smov 32  }
  0x45   :  { %74 = dma.hbm_to_vmem [thread:$0]  %s4252_s4, 4096, %s69_s11, [#allocation9], %s4034_s0, %s4034_s0, %s4035_s30  }
  0x46   :  { %s4036_s15 = smov [#allocation13]  }
  0x47   :  { %s96_s16 = sshll.u32 %s4036_s15, 4  ;;  %s97_s16 = int_to_ptr.vmem [resolvable:$true] %s96_s16 }
  0x48   :  { %s4006_s2 = scalar_lea.vmem %s97_s16, 8192  ;;  %p4011_p3 = scmp.lt.s32.totalorder %s97_s16, %s97_s16 }
  0x49   :  { %p4007_p2 = scmp.ne.s32.totalorder %s97_s16, %s4006_s2  ;;  %p4012_p4 = scmp.lt.s32.totalorder %s4006_s2, %s4006_s2 }
  0x4b   :  { %p4013_p5 = por %p4012_p4, %p4011_p3 }
  0x4d   :  { %p4014_p6 = pnand %p4013_p5, %p4007_p2 }
  0x4f   :  { %4017 = shalt.err (!%p4014_p6)
}
  0x50   :  { %s4037_s1 = smov 128   ;;  %s4038_s17 = smov 8  }
  0x51   :  { %102 = dma.hbm_to_vmem [thread:$0]  %s4256_s8, 8192, %s97_s16, [#allocation12], %s4037_s1, %s4037_s1, %s4038_s17  }
  0x52   :  { %4018 = dma.done.wait [#allocation4], 128  }
  0x53   :  { %4019 = vsyncadd [#allocation4], 4294967168 }
  0x54   :  { %4020 = dma.done.wait [#allocation6], 1536  }
  0x55   :  { %4021 = vsyncadd [#allocation6], 4294965760 }
  0x56   :  { %4022 = dma.done.wait [#allocation9], 4352  }
  0x57   :  { %4023 = vsyncadd [#allocation9], 4294962944 }
  0x58   :  { %4024 = dma.done.wait [#allocation12], 40960  }
  0x59   :  { %4025 = vsyncadd [#allocation12], 4294926336  ;;  %v4039_v1 = vmov 0   ;;  %v157_v2 = vld [vmem:[#allocation10 + $0xc0] sm:$0xff]  ;;  %v158_v4 = vld [vmem:[#allocation10 + $0xc8] sm:$0xff]  ;;  %vm367_vm0 = vcmask 523264  }
  0x5a   :  { %403 = vmatprep.mubr.bf16.mxu0 %v4039_v1  ;;  %444 = vmatprep.mubr.bf16.mxu1 %v4039_v1  ;;  %v161_v3 = vld [vmem:[#allocation10 + $0xe0] sm:$0xff]  ;;  %v162_v6 = vld [vmem:[#allocation10 + $0xe8] sm:$0xff]  ;;  %v159_v32 = vld [vmem:[#allocation10 + $0xd0] sm:$0xff]  ;;  %vm3012_vm15 = vcmask 7168  }
  0x5b   :  { %v3047_v5 = vcombine.high %v157_v2, %v161_v3  ;;  %v3046_v7 = vcombine.low %v157_v2, %v161_v3  ;;  %v149_v8 = vld [vmem:[#allocation10 + $0x80] sm:$0xff]  ;;  %v3049_v10 = vcombine.high %v158_v4, %v162_v6  ;;  %v3048_v11 = vcombine.low %v158_v4, %v162_v6  ;;  %v150_v13 = vld [vmem:[#allocation10 + $0x88] sm:$0xff]  ;;  %v163_v33 = vld [vmem:[#allocation10 + $0xf0] sm:$0xff] }
  0x5c   :  { %v153_v9 = vld [vmem:[#allocation10 + $0xa0] sm:$0xff]  ;;  %v154_v14 = vld [vmem:[#allocation10 + $0xa8] sm:$0xff]  ;;  %v160_v34 = vld [vmem:[#allocation10 + $0xd8] sm:$0xff]  ;;  %v3051_v39 = vcombine.high %v159_v32, %v163_v33  ;;  %v3050_v46 = vcombine.low %v159_v32, %v163_v33 }
  0x5d   :  { %v3039_v12 = vcombine.high %v149_v8, %v153_v9  ;;  %v141_v15 = vld [vmem:[#allocation10 + $0x40] sm:$0xff]  ;;  %379 = vmatprep.subr.bf16.mxu0 %v3047_v5  ;;  %v3041_v16 = vcombine.high %v150_v13, %v154_v14  ;;  %v142_v18 = vld [vmem:[#allocation10 + $0x48] sm:$0xff]  ;;  %420 = vmatprep.subr.bf16.mxu1 %v3049_v10  ;;  %v3038_v20 = vcombine.low %v149_v8, %v153_v9  ;;  %v164_v35 = vld [vmem:[#allocation10 + $0xf8] sm:$0xff] }
  0x5e   :  { %v145_v17 = vld [vmem:[#allocation10 + $0x60] sm:$0xff]  ;;  %v146_v19 = vld [vmem:[#allocation10 + $0x68] sm:$0xff]  ;;  %380 = vmatpush1.bf16.msra.mxu0 %v3046_v7  ;;  %421 = vmatpush1.bf16.msra.mxu1 %v3048_v11  ;;  %v3040_v21 = vcombine.low %v150_v13, %v154_v14  ;;  %v151_v40 = vld [vmem:[#allocation10 + $0x90] sm:$0xff]  ;;  %v3053_v41 = vcombine.high %v160_v34, %v164_v35  ;;  %v3052_v47 = vcombine.low %v160_v34, %v164_v35 }
  0x5f   :  { %381 = vmatprep.subr.bf16.mxu0 %v3039_v12  ;;  %v3031_v22 = vcombine.high %v141_v15, %v145_v17  ;;  %422 = vmatprep.subr.bf16.mxu1 %v3041_v16  ;;  %v3033_v23 = vcombine.high %v142_v18, %v146_v19  ;;  %v133_v24 = vld [vmem:[#allocation10] sm:$0xff]  ;;  %v134_v26 = vld [vmem:[#allocation10 + $0x8] sm:$0xff]  ;;  %v3030_v28 = vcombine.low %v141_v15, %v145_v17  ;;  %v155_v42 = vld [vmem:[#allocation10 + $0xb0] sm:$0xff] }
  0x60   :  { %v137_v25 = vld [vmem:[#allocation10 + $0x20] sm:$0xff]  ;;  %v138_v27 = vld [vmem:[#allocation10 + $0x28] sm:$0xff]  ;;  %v3032_v29 = vcombine.low %v142_v18, %v146_v19  ;;  %v152_v43 = vld [vmem:[#allocation10 + $0x98] sm:$0xff]  ;;  %v3043_v48 = vcombine.high %v151_v40, %v155_v42  ;;  %v3042_v54 = vcombine.low %v151_v40, %v155_v42 }
  0x61   :  { %v3023_v30 = vcombine.high %v133_v24, %v137_v25  ;;  %v3025_v31 = vcombine.high %v134_v26, %v138_v27  ;;  %v3022_v36 = vcombine.low %v133_v24, %v137_v25  ;;  %v131_v37 = vld [vmem:[#allocation3] sm:$0xff]  ;;  %v3024_v38 = vcombine.low %v134_v26, %v138_v27  ;;  %v156_v45 = vld [vmem:[#allocation10 + $0xb8] sm:$0xff]  ;;  %v143_v49 = vld [vmem:[#allocation10 + $0x50] sm:$0xff] }
  0x62   :  { %382 = vmatpush1.bf16.msra.mxu0 %v3038_v20  ;;  %423 = vmatpush1.bf16.msra.mxu1 %v3040_v21  ;;  %v132_v44 = vpack.c.bf16 %v131_v37, %v131_v37  ;;  %v3045_v50 = vcombine.high %v152_v43, %v156_v45  ;;  %v147_v51 = vld [vmem:[#allocation10 + $0x70] sm:$0xff]  ;;  %v144_v52 = vld [vmem:[#allocation10 + $0x58] sm:$0xff]  ;;  %v3044_v55 = vcombine.low %v152_v43, %v156_v45 }
  0x63   :  { %383 = vmatprep.subr.bf16.mxu0 %v3031_v22  ;;  %424 = vmatprep.subr.bf16.mxu1 %v3033_v23  ;;  %v148_v53 = vld [vmem:[#allocation10 + $0x78] sm:$0xff]  ;;  %v3035_v56 = vcombine.high %v143_v49, %v147_v51  ;;  %v135_v57 = vld [vmem:[#allocation10 + $0x10] sm:$0xff]  ;;  %v3034_v62 = vcombine.low %v143_v49, %v147_v51 }
  0x64   :  { %v3037_v58 = vcombine.high %v144_v52, %v148_v53  ;;  %v139_v59 = vld [vmem:[#allocation10 + $0x30] sm:$0xff]  ;;  %v136_v60 = vld [vmem:[#allocation10 + $0x18] sm:$0xff]  ;;  %v3036_v63 = vcombine.low %v144_v52, %v148_v53 }
  0x65   :  { %v140_v61 = vld [vmem:[#allocation10 + $0x38] sm:$0xff]  ;;  %v3027_v0 = vcombine.high %v135_v57, %v139_v59  ;;  %v3026_v3 = vcombine.low %v135_v57, %v139_v59  ;;  %v3396_v5 = vld [vmem:[#allocation11 + $0xe4] ss:$16 sps:$4 sm:$0xff]   ;;  %v3394_v7 = vld [vmem:[#allocation11 + $0xe0] ss:$16 sps:$4 sm:$0xff]  }
  0x66   :  { %384 = vmatpush1.bf16.msra.mxu0 %v3030_v28  ;;  %425 = vmatpush1.bf16.msra.mxu1 %v3032_v29  ;;  %v3029_v2 = vcombine.high %v136_v60, %v140_v61  ;;  %v3028_v4 = vcombine.low %v136_v60, %v140_v61  ;;  %v3399_v6 = vld [vmem:[#allocation11 + $0x2e4] ss:$16 sps:$4 sm:$0xff]   ;;  %v3400_v10 = vld [vmem:[#allocation11 + $0xc0] ss:$16 sps:$4 sm:$0xff]  }
  0x67   :  { %385 = vmatprep.subr.bf16.mxu0 %v3023_v30  ;;  %426 = vmatprep.subr.bf16.mxu1 %v3025_v31  ;;  %v3402_v8 = vld [vmem:[#allocation11 + $0xc4] ss:$16 sps:$4 sm:$0xff]   ;;  %v3403_v11 = vld [vmem:[#allocation11 + $0x2c0] ss:$16 sps:$4 sm:$0xff]  }
  0x68   :  { %v3405_v9 = vld [vmem:[#allocation11 + $0x2c4] ss:$16 sps:$4 sm:$0xff]   ;;  %v3406_v14 = vld [vmem:[#allocation11 + $0xa0] ss:$16 sps:$4 sm:$0xff]  }
  0x69   :  { %v3408_v12 = vld [vmem:[#allocation11 + $0xa4] ss:$16 sps:$4 sm:$0xff]   ;;  %v3409_v15 = vld [vmem:[#allocation11 + $0x2a0] ss:$16 sps:$4 sm:$0xff]  }
  0x6a   :  { %386 = vmatpush1.bf16.msra.mxu0 %v3022_v36  ;;  %427 = vmatpush1.bf16.msra.mxu1 %v3024_v38  ;;  %v3411_v13 = vld [vmem:[#allocation11 + $0x2a4] ss:$16 sps:$4 sm:$0xff]   ;;  %v3412_v18 = vld [vmem:[#allocation11 + $0x80] ss:$16 sps:$4 sm:$0xff]  }
  0x6b   :  { %461 = vmatprep.subr.bf16.mxu0 %v3051_v39  ;;  %502 = vmatprep.subr.bf16.mxu1 %v3053_v41  ;;  %v3414_v16 = vld [vmem:[#allocation11 + $0x84] ss:$16 sps:$4 sm:$0xff]   ;;  %v3415_v19 = vld [vmem:[#allocation11 + $0x280] ss:$16 sps:$4 sm:$0xff]  }
  0x6c   :  { %v3417_v17 = vld [vmem:[#allocation11 + $0x284] ss:$16 sps:$4 sm:$0xff]   ;;  %v3418_v22 = vld [vmem:[#allocation11 + $0x60] ss:$16 sps:$4 sm:$0xff]  }
  0x6d   :  { %3054 = vmatmul.mubr.msk.bf16.vlgmr.msra.gmra.mxu0 %vm367_vm0, %v132_v44  ;;  %3055 = vmatmul.mubr.msk.bf16.vlgmr.msra.gmra.mxu1 %vm367_vm0, %v132_v44  ;;  %v3420_v20 = vld [vmem:[#allocation11 + $0x64] ss:$16 sps:$4 sm:$0xff]   ;;  %v3421_v23 = vld [vmem:[#allocation11 + $0x260] ss:$16 sps:$4 sm:$0xff]  }
  0x6e   :  { %462 = vmatpush1.bf16.msra.mxu0 %v3050_v46  ;;  %503 = vmatpush1.bf16.msra.mxu1 %v3052_v47  ;;  %v3423_v21 = vld [vmem:[#allocation11 + $0x264] ss:$16 sps:$4 sm:$0xff]   ;;  %v3424_v26 = vld [vmem:[#allocation11 + $0x40] ss:$16 sps:$4 sm:$0xff]  }
  0x6f   :  { %463 = vmatprep.subr.bf16.mxu0 %v3043_v48  ;;  %504 = vmatprep.subr.bf16.mxu1 %v3045_v50  ;;  %v3426_v24 = vld [vmem:[#allocation11 + $0x44] ss:$16 sps:$4 sm:$0xff]   ;;  %v3427_v27 = vld [vmem:[#allocation11 + $0x240] ss:$16 sps:$4 sm:$0xff]  }
  0x70   :  { %485 = vmatprep.mubr.bf16.mxu0 %v4039_v1  ;;  %526 = vmatprep.mubr.bf16.mxu1 %v4039_v1  ;;  %v3397_v1 = vld [vmem:[#allocation11 + $0x2e0] ss:$16 sps:$4 sm:$0xff]   ;;  %v3429_v25 = vld [vmem:[#allocation11 + $0x244] ss:$16 sps:$4 sm:$0xff]  }
  0x71   :  { %v3432_v28 = vld [vmem:[#allocation11 + $0x24] ss:$16 sps:$4 sm:$0xff]   ;;  %v3430_v30 = vld [vmem:[#allocation11 + $0x20] ss:$16 sps:$4 sm:$0xff]  }
  0x72   :  { %464 = vmatpush1.bf16.msra.mxu0 %v3042_v54  ;;  %505 = vmatpush1.bf16.msra.mxu1 %v3044_v55  ;;  %v3435_v29 = vld [vmem:[#allocation11 + $0x224] ss:$16 sps:$4 sm:$0xff]   ;;  %v3433_v31 = vld [vmem:[#allocation11 + $0x220] ss:$16 sps:$4 sm:$0xff]  }
  0x73   :  { %465 = vmatprep.subr.bf16.mxu0 %v3035_v56  ;;  %506 = vmatprep.subr.bf16.mxu1 %v3037_v58  ;;  %v3438_v32 = vld [vmem:[#allocation11 + $0x4] ss:$16 sps:$4 sm:$0xff]   ;;  %v3436_v34 = vld [vmem:[#allocation11] ss:$16 sps:$4 sm:$0xff]  }
  0x74   :  { %v3441_v33 = vld [vmem:[#allocation11 + $0x204] ss:$16 sps:$4 sm:$0xff]   ;;  %v3439_v35 = vld [vmem:[#allocation11 + $0x200] ss:$16 sps:$4 sm:$0xff]  }
  0x75   :  { %v3444_v36 = vld [vmem:[#allocation11 + $0x1e4] ss:$16 sps:$4 sm:$0xff]   ;;  %v3442_v38 = vld [vmem:[#allocation11 + $0x1e0] ss:$16 sps:$4 sm:$0xff]  }
  0x76   :  { %466 = vmatpush1.bf16.msra.mxu0 %v3034_v62  ;;  %507 = vmatpush1.bf16.msra.mxu1 %v3036_v63  ;;  %v3447_v37 = vld [vmem:[#allocation11 + $0x3e4] ss:$16 sps:$4 sm:$0xff]   ;;  %v3445_v39 = vld [vmem:[#allocation11 + $0x3e0] ss:$16 sps:$4 sm:$0xff]  }
  0x77   :  { %467 = vmatprep.subr.bf16.mxu0 %v3027_v0  ;;  %508 = vmatprep.subr.bf16.mxu1 %v3029_v2  ;;  %v3450_v40 = vld [vmem:[#allocation11 + $0x1c4] ss:$16 sps:$4 sm:$0xff]   ;;  %v3448_v42 = vld [vmem:[#allocation11 + $0x1c0] ss:$16 sps:$4 sm:$0xff]  }
  0x78   :  { %v3453_v41 = vld [vmem:[#allocation11 + $0x3c4] ss:$16 sps:$4 sm:$0xff]   ;;  %v3451_v43 = vld [vmem:[#allocation11 + $0x3c0] ss:$16 sps:$4 sm:$0xff]  }
  0x79   :  { %v3459_v45 = vld [vmem:[#allocation11 + $0x3a4] ss:$16 sps:$4 sm:$0xff]   ;;  %v3454_v46 = vld [vmem:[#allocation11 + $0x1a0] ss:$16 sps:$4 sm:$0xff]  }
  0x7a   :  { %468 = vmatpush1.bf16.msra.mxu0 %v3026_v3  ;;  %509 = vmatpush1.bf16.msra.mxu1 %v3028_v4  ;;  %v3457_v47 = vld [vmem:[#allocation11 + $0x3a0] ss:$16 sps:$4 sm:$0xff]   ;;  %v3462_v48 = vld [vmem:[#allocation11 + $0x184] ss:$16 sps:$4 sm:$0xff]  }
  0x7b   :  { %2141 = vmatprep.subr.bf16.mxu0 %v3396_v5  ;;  %2182 = vmatprep.subr.bf16.mxu1 %v3399_v6  ;;  %v3465_v49 = vld [vmem:[#allocation11 + $0x384] ss:$16 sps:$4 sm:$0xff]   ;;  %v3460_v50 = vld [vmem:[#allocation11 + $0x180] ss:$16 sps:$4 sm:$0xff]  }
  0x7c   :  { %v3463_v51 = vld [vmem:[#allocation11 + $0x380] ss:$16 sps:$4 sm:$0xff]   ;;  %v3468_v52 = vld [vmem:[#allocation11 + $0x164] ss:$16 sps:$4 sm:$0xff]  }
  0x7d   :  { %3056 = vmatmul.mubr.msk.bf16.vlgmr.msra.gmra.mxu0 %vm367_vm0, %v132_v44  ;;  %3057 = vmatmul.mubr.msk.bf16.vlgmr.msra.gmra.mxu1 %vm367_vm0, %v132_v44  ;;  %v3456_v44 = vld [vmem:[#allocation11 + $0x1a4] ss:$16 sps:$4 sm:$0xff]   ;;  %v3466_v54 = vld [vmem:[#allocation11 + $0x160] ss:$16 sps:$4 sm:$0xff]  }
  0x7e   :  { %2142 = vmatpush1.bf16.msra.mxu0 %v3394_v7  ;;  %2183 = vmatpush1.bf16.msra.mxu1 %v3397_v1  ;;  %v3471_v53 = vld [vmem:[#allocation11 + $0x364] ss:$16 sps:$4 sm:$0xff]   ;;  %v3469_v55 = vld [vmem:[#allocation11 + $0x360] ss:$16 sps:$4 sm:$0xff]   ;;  %v167_v7 = vlaneseq }
  0x7f   :  { %2143 = vmatprep.subr.bf16.mxu0 %v3402_v8  ;;  %2184 = vmatprep.subr.bf16.mxu1 %v3405_v9  ;;  %v3474_v56 = vld [vmem:[#allocation11 + $0x144] ss:$16 sps:$4 sm:$0xff]   ;;  %v3472_v58 = vld [vmem:[#allocation11 + $0x140] ss:$16 sps:$4 sm:$0xff]  }
  0x80   :  { %v3477_v57 = vld [vmem:[#allocation11 + $0x344] ss:$16 sps:$4 sm:$0xff]   ;;  %v3475_v59 = vld [vmem:[#allocation11 + $0x340] ss:$16 sps:$4 sm:$0xff]   ;;  %v4137_v1 = vshrl.u32 %v167_v7, 7 }
  0x81   :  { %v3480_v60 = vld [vmem:[#allocation11 + $0x124] ss:$16 sps:$4 sm:$0xff]   ;;  %v3478_v62 = vld [vmem:[#allocation11 + $0x120] ss:$16 sps:$4 sm:$0xff]  }
  0x82   :  { %2144 = vmatpush1.bf16.msra.mxu0 %v3400_v10  ;;  %2185 = vmatpush1.bf16.msra.mxu1 %v3403_v11  ;;  %v3483_v61 = vld [vmem:[#allocation11 + $0x324] ss:$16 sps:$4 sm:$0xff]   ;;  %v3481_v63 = vld [vmem:[#allocation11 + $0x320] ss:$16 sps:$4 sm:$0xff]   ;;  %v4140_v8 = vsub.s32 0, %v4137_v1  ;;  %v177_v10 = vsub.s32 2, %v4137_v1 }
  0x83   :  { %2145 = vmatprep.subr.bf16.mxu0 %v3408_v12  ;;  %2186 = vmatprep.subr.bf16.mxu1 %v3411_v13  ;;  %v3486_v0 = vld [vmem:[#allocation11 + $0x104] ss:$16 sps:$4 sm:$0xff]   ;;  %v3484_v3 = vld [vmem:[#allocation11 + $0x100] ss:$16 sps:$4 sm:$0xff]   ;;  %v4149_v11 = vsub.s32 1, %v4137_v1  ;;  %v181_v12 = vsub.s32 3, %v4137_v1 }
  0x84   :  { %v3489_v2 = vld [vmem:[#allocation11 + $0x304] ss:$16 sps:$4 sm:$0xff]   ;;  %v3487_v4 = vld [vmem:[#allocation11 + $0x300] ss:$16 sps:$4 sm:$0xff]  }
  0x85   :  { %v3492_v5 = vld [vmem:[#allocation11 + $0x4e4] ss:$16 sps:$4 sm:$0xff]  }
  0x86   :  { %2146 = vmatpush1.bf16.msra.mxu0 %v3406_v14  ;;  %2187 = vmatpush1.bf16.msra.mxu1 %v3409_v15  ;;  %v3495_v6 = vld [vmem:[#allocation11 + $0x6e4] ss:$16 sps:$4 sm:$0xff]  }
  0x87   :  { %2147 = vmatprep.subr.bf16.mxu0 %v3414_v16  ;;  %2188 = vmatprep.subr.bf16.mxu1 %v3417_v17  ;;  %v4145_v9 = vld [vmem:[%s4253_s5] sm:$0xff] }
  0x88   :  { %v170_v13 = vrot.slane %v4145_v9, %v4140_v8  ;;  %v178_v14 = vrot.slane %v4145_v9, %v177_v10  ;;  %v174_v15 = vrot.slane %v4145_v9, %v4149_v11  ;;  %v182_v17 = vrot.slane %v4145_v9, %v181_v12 }
  0x8a   :  { %2148 = vmatpush1.bf16.msra.mxu0 %v3412_v18  ;;  %2189 = vmatpush1.bf16.msra.mxu1 %v3415_v19 }
  0x8b   :  { %2149 = vmatprep.subr.bf16.mxu0 %v3420_v20  ;;  %2190 = vmatprep.subr.bf16.mxu1 %v3423_v21 }
  0x8e   :  { %2150 = vmatpush1.bf16.msra.mxu0 %v3418_v22  ;;  %2191 = vmatpush1.bf16.msra.mxu1 %v3421_v23 }
  0x8f   :  { %2151 = vmatprep.subr.bf16.mxu0 %v3426_v24  ;;  %2192 = vmatprep.subr.bf16.mxu1 %v3429_v25  ;;  %v559_v25 = vld [vmem:[#allocation5] sm:$0xff] }
  0x92   :  { %2152 = vmatpush1.bf16.msra.mxu0 %v3424_v26  ;;  %2193 = vmatpush1.bf16.msra.mxu1 %v3427_v27 }
  0x93   :  { %2153 = vmatprep.subr.bf16.mxu0 %v3432_v28  ;;  %2194 = vmatprep.subr.bf16.mxu1 %v3435_v29 }
  0x96   :  { %2154 = vmatpush1.bf16.msra.mxu0 %v3430_v30  ;;  %2195 = vmatpush1.bf16.msra.mxu1 %v3433_v31  ;;  %v561_v30 = vld [vmem:[#allocation5 + $0x10] sm:$0xff] }
  0x97   :  { %2155 = vmatprep.subr.bf16.mxu0 %v3438_v32  ;;  %2196 = vmatprep.subr.bf16.mxu1 %v3441_v33  ;;  %v560_v33 = vld [vmem:[#allocation5 + $0x8] sm:$0xff] }
  0x9a   :  { %2156 = vmatpush1.bf16.msra.mxu0 %v3436_v34  ;;  %2197 = vmatpush1.bf16.msra.mxu1 %v3439_v35 }
  0x9b   :  { %2157 = vmatprep.subr.bf16.mxu0 %v3444_v36  ;;  %2198 = vmatprep.subr.bf16.mxu1 %v3447_v37  ;;  %v562_v37 = vld [vmem:[#allocation5 + $0x18] sm:$0xff] }
  0x9e   :  { %2158 = vmatpush2.bf16.msra.mxu0 %v3442_v38  ;;  %2199 = vmatpush2.bf16.msra.mxu1 %v3445_v39 }
  0x9f   :  { %2159 = vmatprep.subr.bf16.mxu0 %v3450_v40  ;;  %2200 = vmatprep.subr.bf16.mxu1 %v3453_v41 }
  0xa2   :  { %2160 = vmatpush2.bf16.msra.mxu0 %v3448_v42  ;;  %2201 = vmatpush2.bf16.msra.mxu1 %v3451_v43 }
  0xa3   :  { %2161 = vmatprep.subr.bf16.mxu0 %v3456_v44  ;;  %2202 = vmatprep.subr.bf16.mxu1 %v3459_v45 }
  0xa6   :  { %2162 = vmatpush2.bf16.msra.mxu0 %v3454_v46  ;;  %2203 = vmatpush2.bf16.msra.mxu1 %v3457_v47  ;;  %v3490_v46 = vld [vmem:[#allocation11 + $0x4e0] ss:$16 sps:$4 sm:$0xff]  }
  0xa7   :  { %2163 = vmatprep.subr.bf16.mxu0 %v3462_v48  ;;  %2204 = vmatprep.subr.bf16.mxu1 %v3465_v49  ;;  %v3493_v49 = vld [vmem:[#allocation11 + $0x6e0] ss:$16 sps:$4 sm:$0xff]  }
  0xaa   :  { %2164 = vmatpush2.bf16.msra.mxu0 %v3460_v50  ;;  %2205 = vmatpush2.bf16.msra.mxu1 %v3463_v51  ;;  %v3498_v50 = vld [vmem:[#allocation11 + $0x4c4] ss:$16 sps:$4 sm:$0xff]   ;;  %v189_v51 = vsub.s32 5, %v4137_v1 }
  0xab   :  { %2165 = vmatprep.subr.bf16.mxu0 %v3468_v52  ;;  %2206 = vmatprep.subr.bf16.mxu1 %v3471_v53  ;;  %v3501_v53 = vld [vmem:[#allocation11 + $0x6c4] ss:$16 sps:$4 sm:$0xff]  }
  0xae   :  { %2166 = vmatpush2.bf16.msra.mxu0 %v3466_v54  ;;  %2207 = vmatpush2.bf16.msra.mxu1 %v3469_v55  ;;  %v197_v54 = vsub.s32 7, %v4137_v1  ;;  %v3496_v55 = vld [vmem:[#allocation11 + $0x4c0] ss:$16 sps:$4 sm:$0xff]  }
  0xaf   :  { %2167 = vmatprep.subr.bf16.mxu0 %v3474_v56  ;;  %2208 = vmatprep.subr.bf16.mxu1 %v3477_v57  ;;  %v3499_v56 = vld [vmem:[#allocation11 + $0x6c0] ss:$16 sps:$4 sm:$0xff]   ;;  %v3504_v57 = vld [vmem:[#allocation11 + $0x4a4] ss:$16 sps:$4 sm:$0xff]  }
  0xb2   :  { %2168 = vmatpush2.bf16.msra.mxu0 %v3472_v58  ;;  %2209 = vmatpush2.bf16.msra.mxu1 %v3475_v59  ;;  %v190_v58 = vrot.slane %v4145_v9, %v189_v51  ;;  %v3507_v59 = vld [vmem:[#allocation11 + $0x6a4] ss:$16 sps:$4 sm:$0xff]   ;;  %v3541_v51 = vld [vmem:[#allocation11 + $0x7e0] ss:$16 sps:$4 sm:$0xff]  }
  0xb3   :  { %2169 = vmatprep.subr.bf16.mxu0 %v3480_v60  ;;  %2210 = vmatprep.subr.bf16.mxu1 %v3483_v61  ;;  %v198_v61 = vrot.slane %v4145_v9, %v197_v54  ;;  %v3549_v54 = vld [vmem:[#allocation11 + $0x7c4] ss:$16 sps:$4 sm:$0xff]  }
  0xb6   :  { %2170 = vmatpush2.bf16.msra.mxu0 %v3478_v62  ;;  %2211 = vmatpush2.bf16.msra.mxu1 %v3481_v63  ;;  %v3502_v63 = vld [vmem:[#allocation11 + $0x4a0] ss:$16 sps:$4 sm:$0xff]  }
  0xb7   :  { %2171 = vmatprep.subr.bf16.mxu0 %v3486_v0  ;;  %2212 = vmatprep.subr.bf16.mxu1 %v3489_v2  ;;  %v3505_v2 = vld [vmem:[#allocation11 + $0x6a0] ss:$16 sps:$4 sm:$0xff]  }
  0xba   :  { %2172 = vmatpush2.bf16.msra.mxu0 %v3484_v3  ;;  %2213 = vmatpush2.bf16.msra.mxu1 %v3487_v4  ;;  %v3510_v3 = vld [vmem:[#allocation11 + $0x484] ss:$16 sps:$4 sm:$0xff]  }
  0xbb   :  { %2223 = vmatprep.subr.bf16.mxu0 %v3492_v5  ;;  %2264 = vmatprep.subr.bf16.mxu1 %v3495_v6  ;;  %v3513_v6 = vld [vmem:[#allocation11 + $0x684] ss:$16 sps:$4 sm:$0xff]  }
 0x12d   :  { %v405_v16 = vpop.f32.mrf.mxu0  ;;  %v446_v19 = vpop.f32.mrf.mxu1 }
 0x12e   :  { %v406_v18 = vadd.f32 %v405_v16, %v170_v13  ;;  %v447_v20 = vadd.f32 %v446_v19, %v178_v14  ;;  %v564_v16 = vld [vmem:[#allocation5 + $0x28] sm:$0xff] }
 0x12f   :  { %v407_v21 = vpop.f32.mrf.mxu0  ;;  %v448_v24 = vpop.f32.mrf.mxu1 }
 0x130   :  { %vm535_vm1 = vcmp.gt.f32.partialorder %v406_v18, 0.0  ;;  %v543_v22 = vmul.f32 0.2, %v406_v18  ;;  %v408_v23 = vadd.f32 %v407_v21, %v174_v15  ;;  %vm537_vm2 = vcmp.gt.f32.partialorder %v447_v20, 0.0  ;;  %v3511_v21 = vld [vmem:[#allocation11 + $0x680] ss:$16 sps:$4 sm:$0xff]  }
 0x131   :  { %v545_v26 = vmul.f32 0.2, %v447_v20  ;;  %v449_v27 = vadd.f32 %v448_v24, %v182_v17  ;;  %v409_v28 = vpop.f32.mrf.mxu0  ;;  %v450_v32 = vpop.f32.mrf.mxu1  ;;  %v3508_v17 = vld [vmem:[#allocation11 + $0x480] ss:$16 sps:$4 sm:$0xff]  }
 0x132   :  { %v551_v29 = vsel %vm535_vm1, %v406_v18, %v543_v22  ;;  %vm536_vm3 = vcmp.gt.f32.partialorder %v408_v23, 0.0  ;;  %v544_v31 = vmul.f32 0.2, %v408_v23  ;;  %v3516_v22 = vld [vmem:[#allocation11 + $0x464] ss:$16 sps:$4 sm:$0xff]  }
 0x133   :  { %v553_v34 = vsel %vm537_vm2, %v447_v20, %v545_v26  ;;  %vm538_vm4 = vcmp.gt.f32.partialorder %v449_v27, 0.0  ;;  %v546_v35 = vmul.f32 0.2, %v449_v27  ;;  %v410_v36 = vpop.f32.mrf.mxu0  ;;  %v567_v38 = vmul.f32 %v559_v25, %v551_v29  ;;  %v451_v40 = vpop.f32.mrf.mxu1  ;;  %v566_v20 = vld [vmem:[#allocation5 + $0x38] sm:$0xff]  ;;  %v3519_v25 = vld [vmem:[#allocation11 + $0x664] ss:$16 sps:$4 sm:$0xff]  }
 0x134   :  { %v552_v39 = vsel %vm536_vm3, %v408_v23, %v544_v31  ;;  %v569_v41 = vmul.f32 %v561_v30, %v553_v34  ;;  %v3514_v29 = vld [vmem:[#allocation11 + $0x460] ss:$16 sps:$4 sm:$0xff]   ;;  %v3522_v32 = vld [vmem:[#allocation11 + $0x444] ss:$16 sps:$4 sm:$0xff]  }
 0x135   :  { %v554_v42 = vsel %vm538_vm4, %v449_v27, %v546_v35  ;;  %v568_v43 = vmul.f32 %v560_v33, %v552_v39  ;;  %v4164_v47 = vpack.c.bf16 %v567_v38, %v567_v38  ;;  %v3517_v31 = vld [vmem:[#allocation11 + $0x660] ss:$16 sps:$4 sm:$0xff]   ;;  %v3525_v34 = vld [vmem:[#allocation11 + $0x644] ss:$16 sps:$4 sm:$0xff]  }
 0x136   :  { %v570_v44 = vmul.f32 %v562_v37, %v554_v42  ;;  %v4169_v52 = vpack.c.bf16 %v569_v41, %v569_v41  ;;  %v3520_v35 = vld [vmem:[#allocation11 + $0x440] ss:$16 sps:$4 sm:$0xff]   ;;  %v3528_v37 = vld [vmem:[#allocation11 + $0x424] ss:$16 sps:$4 sm:$0xff]  }
 0x137   :  { %v4162_v45 = vpack.c.bf16 %v568_v43, %v568_v43  ;;  %v3523_v36 = vld [vmem:[#allocation11 + $0x640] ss:$16 sps:$4 sm:$0xff]   ;;  %v3531_v38 = vld [vmem:[#allocation11 + $0x624] ss:$16 sps:$4 sm:$0xff]  }
 0x138   :  { %v4166_v48 = vpack.c.bf16 %v570_v44, %v570_v44  ;;  %v3526_v39 = vld [vmem:[#allocation11 + $0x420] ss:$16 sps:$4 sm:$0xff]   ;;  %v3534_v41 = vld [vmem:[#allocation11 + $0x404] ss:$16 sps:$4 sm:$0xff]  }
 0x139   :  { %2173 = vmatprep.mubr.bf16.mxu0 %v4162_v45  ;;  %v3529_v40 = vld [vmem:[#allocation11 + $0x620] ss:$16 sps:$4 sm:$0xff]   ;;  %v3537_v42 = vld [vmem:[#allocation11 + $0x604] ss:$16 sps:$4 sm:$0xff]  }
 0x13a   :  { %2214 = vmatprep.mubr.bf16.mxu1 %v4166_v48  ;;  %2174 = vmatmul.mubr.bf16.vlgmr.msra.gmra.mxu0 %v4164_v47  ;;  %v3532_v43 = vld [vmem:[#allocation11 + $0x400] ss:$16 sps:$4 sm:$0xff]  }
 0x13b   :  { %2215 = vmatmul.mubr.bf16.vlgmr.msra.gmra.mxu1 %v4169_v52  ;;  %2224 = vmatpush1.bf16.msra.mxu0 %v3490_v46  ;;  %v3535_v44 = vld [vmem:[#allocation11 + $0x600] ss:$16 sps:$4 sm:$0xff]   ;;  %v3540_v46 = vld [vmem:[#allocation11 + $0x5e4] ss:$16 sps:$4 sm:$0xff]  }
 0x13c   :  { %2265 = vmatpush1.bf16.msra.mxu1 %v3493_v49  ;;  %2225 = vmatprep.subr.bf16.mxu0 %v3498_v50  ;;  %v3543_v49 = vld [vmem:[#allocation11 + $0x7e4] ss:$16 sps:$4 sm:$0xff]   ;;  %v3538_v50 = vld [vmem:[#allocation11 + $0x5e0] ss:$16 sps:$4 sm:$0xff]  }
 0x13d   :  { %2266 = vmatprep.subr.bf16.mxu1 %v3501_v53  ;;  %v4177_v60 = vpop.f32.mrf.mxu0  ;;  %v4180_v62 = vpop.f32.mrf.mxu1  ;;  %v3546_v53 = vld [vmem:[#allocation11 + $0x5c4] ss:$16 sps:$4 sm:$0xff]  }
 0x13f   :  { %2226 = vmatpush1.bf16.msra.mxu0 %v3496_v55  ;;  %v489_v0 = vpop.f32.mrf.mxu0  ;;  %v530_v5 = vpop.f32.mrf.mxu1  ;;  %v3544_v55 = vld [vmem:[#allocation11 + $0x5c0] ss:$16 sps:$4 sm:$0xff]  }
 0x140   :  { %2267 = vmatpush1.bf16.msra.mxu1 %v3499_v56  ;;  %2227 = vmatprep.subr.bf16.mxu0 %v3504_v57  ;;  %v490_v4 = vadd.f32 %v489_v0, %v190_v58  ;;  %v531_v13 = vadd.f32 %v530_v5, %v198_v61  ;;  %v3547_v56 = vld [vmem:[#allocation11 + $0x7c0] ss:$16 sps:$4 sm:$0xff]   ;;  %v3552_v57 = vld [vmem:[#allocation11 + $0x5a4] ss:$16 sps:$4 sm:$0xff]  }
 0x141   :  { %2268 = vmatprep.subr.bf16.mxu1 %v3507_v59  ;;  %v491_v7 = vpop.f32.mrf.mxu0  ;;  %v532_v15 = vpop.f32.mrf.mxu1  ;;  %v3555_v58 = vld [vmem:[#allocation11 + $0x7a4] ss:$16 sps:$4 sm:$0xff]   ;;  %v3550_v59 = vld [vmem:[#allocation11 + $0x5a0] ss:$16 sps:$4 sm:$0xff]  }
 0x142   :  { %vm540_vm5 = vcmp.gt.f32.partialorder %v490_v4, 0.0  ;;  %v548_v14 = vmul.f32 0.2, %v490_v4  ;;  %vm542_vm6 = vcmp.gt.f32.partialorder %v531_v13, 0.0  ;;  %v550_v18 = vmul.f32 0.2, %v531_v13 }
 0x143   :  { %2228 = vmatpush1.bf16.msra.mxu0 %v3502_v63  ;;  %v492_v19 = vpop.f32.mrf.mxu0  ;;  %v533_v24 = vpop.f32.mrf.mxu1  ;;  %v3553_v61 = vld [vmem:[#allocation11 + $0x7a0] ss:$16 sps:$4 sm:$0xff]   ;;  %v3558_v63 = vld [vmem:[#allocation11 + $0x584] ss:$16 sps:$4 sm:$0xff]  }
 0x144   :  { %2269 = vmatpush1.bf16.msra.mxu1 %v3505_v2  ;;  %2229 = vmatprep.subr.bf16.mxu0 %v3510_v3  ;;  %v556_v23 = vsel %vm540_vm5, %v490_v4, %v548_v14  ;;  %v558_v26 = vsel %vm542_vm6, %v531_v13, %v550_v18  ;;  %v3561_v0 = vld [vmem:[#allocation11 + $0x784] ss:$16 sps:$4 sm:$0xff]   ;;  %v185_v2 = vsub.s32 4, %v4137_v1  ;;  %v193_v3 = vsub.s32 6, %v4137_v1  ;;  %v3556_v4 = vld [vmem:[#allocation11 + $0x580] ss:$16 sps:$4 sm:$0xff]  }
 0x145   :  { %2270 = vmatprep.subr.bf16.mxu1 %v3513_v6  ;;  %v572_v27 = vmul.f32 %v564_v16, %v556_v23  ;;  %v574_v28 = vmul.f32 %v566_v20, %v558_v26  ;;  %v3559_v5 = vld [vmem:[#allocation11 + $0x780] ss:$16 sps:$4 sm:$0xff]   ;;  %v3564_v6 = vld [vmem:[#allocation11 + $0x564] ss:$16 sps:$4 sm:$0xff]  }
 0x146   :  { %v186_v7 = vrot.slane %v4145_v9, %v185_v2  ;;  %v3567_v13 = vld [vmem:[#allocation11 + $0x764] ss:$16 sps:$4 sm:$0xff]   ;;  %v194_v14 = vrot.slane %v4145_v9, %v193_v3  ;;  %v3562_v15 = vld [vmem:[#allocation11 + $0x560] ss:$16 sps:$4 sm:$0xff]   ;;  %v3621_v2 = vld [vmem:[#allocation11 + $0x24c] ss:$16 sps:$4 sm:$0xff]  }
 0x147   :  { %2230 = vmatpush1.bf16.msra.mxu0 %v3508_v17  ;;  %v4182_v30 = vpack.c.bf16 %v572_v27, %v572_v27  ;;  %v4184_v33 = vpack.c.bf16 %v574_v28, %v574_v28  ;;  %v3565_v16 = vld [vmem:[#allocation11 + $0x760] ss:$16 sps:$4 sm:$0xff]   ;;  %v3570_v17 = vld [vmem:[#allocation11 + $0x544] ss:$16 sps:$4 sm:$0xff]   ;;  %v3616_v3 = vld [vmem:[#allocation11 + $0x48] ss:$16 sps:$4 sm:$0xff]  }
 0x148   :  { %2271 = vmatpush1.bf16.msra.mxu1 %v3511_v21  ;;  %2231 = vmatprep.subr.bf16.mxu0 %v3516_v22  ;;  %v488_v18 = vadd.f32 %v4177_v60, %v186_v7  ;;  %v3573_v19 = vld [vmem:[#allocation11 + $0x744] ss:$16 sps:$4 sm:$0xff]   ;;  %v529_v20 = vadd.f32 %v4180_v62, %v194_v14  ;;  %v3568_v21 = vld [vmem:[#allocation11 + $0x540] ss:$16 sps:$4 sm:$0xff]   ;;  %v3622_v7 = vld [vmem:[#allocation11 + $0x28] ss:$16 sps:$4 sm:$0xff]  }
 0x149   :  { %2272 = vmatprep.subr.bf16.mxu1 %v3519_v25  ;;  %2255 = vmatprep.mubr.bf16.mxu0 %v4182_v30  ;;  %v3571_v22 = vld [vmem:[#allocation11 + $0x740] ss:$16 sps:$4 sm:$0xff]   ;;  %v3576_v23 = vld [vmem:[#allocation11 + $0x524] ss:$16 sps:$4 sm:$0xff]   ;;  %v3630_v14 = vld [vmem:[#allocation11 + $0xc] ss:$16 sps:$4 sm:$0xff]  }
 0x14a   :  { %2296 = vmatprep.mubr.bf16.mxu1 %v4184_v33  ;;  %v547_v24 = vmul.f32 0.2, %v488_v18  ;;  %v3579_v9 = vld [vmem:[#allocation11 + $0x724] ss:$16 sps:$4 sm:$0xff]   ;;  %vm539_vm7 = vcmp.gt.f32.partialorder %v488_v18, 0.0  ;;  %vm541_vm8 = vcmp.gt.f32.partialorder %v529_v20, 0.0 }
 0x14b   :  { %2232 = vmatpush1.bf16.msra.mxu0 %v3514_v29  ;;  %v549_v25 = vmul.f32 0.2, %v529_v20  ;;  %v3574_v26 = vld [vmem:[#allocation11 + $0x520] ss:$16 sps:$4 sm:$0xff]   ;;  %v3582_v27 = vld [vmem:[#allocation11 + $0x504] ss:$16 sps:$4 sm:$0xff]  }
 0x14c   :  { %2273 = vmatpush1.bf16.msra.mxu1 %v3517_v31  ;;  %2233 = vmatprep.subr.bf16.mxu0 %v3522_v32  ;;  %v3577_v60 = vld [vmem:[#allocation11 + $0x720] ss:$16 sps:$4 sm:$0xff]   ;;  %v555_v28 = vsel %vm539_vm7, %v488_v18, %v547_v24  ;;  %v3585_v29 = vld [vmem:[#allocation11 + $0x704] ss:$16 sps:$4 sm:$0xff]   ;;  %v3636_v18 = vld [vmem:[#allocation11 + $0x1ec] ss:$16 sps:$4 sm:$0xff]  }
 0x14d   :  { %2274 = vmatprep.subr.bf16.mxu1 %v3525_v34  ;;  %v563_v62 = vld [vmem:[#allocation5 + $0x20] sm:$0xff]  ;;  %v557_v31 = vsel %vm541_vm8, %v529_v20, %v549_v25  ;;  %v565_v32 = vld [vmem:[#allocation5 + $0x30] sm:$0xff]  ;;  %v3634_v20 = vld [vmem:[#allocation11 + $0x1e8] ss:$16 sps:$4 sm:$0xff]  }
 0x14e   :  { %v3580_v34 = vld [vmem:[#allocation11 + $0x500] ss:$16 sps:$4 sm:$0xff]   ;;  %v3640_v24 = vld [vmem:[#allocation11 + $0x1c8] ss:$16 sps:$4 sm:$0xff]   ;;  %v3648_v25 = vld [vmem:[#allocation11 + $0x1ac] ss:$16 sps:$4 sm:$0xff]  }
 0x14f   :  { %2234 = vmatpush1.bf16.msra.mxu0 %v3520_v35  ;;  %v571_v35 = vmul.f32 %v563_v62, %v555_v28  ;;  %v3654_v28 = vld [vmem:[#allocation11 + $0x18c] ss:$16 sps:$4 sm:$0xff]  }
 0x150   :  { %2275 = vmatpush1.bf16.msra.mxu1 %v3523_v36  ;;  %2235 = vmatprep.subr.bf16.mxu0 %v3528_v37  ;;  %v3583_v36 = vld [vmem:[#allocation11 + $0x700] ss:$16 sps:$4 sm:$0xff]   ;;  %v3588_v37 = vld [vmem:[#allocation11 + $0xec] ss:$16 sps:$4 sm:$0xff]  }
 0x151   :  { %2276 = vmatprep.subr.bf16.mxu1 %v3531_v38  ;;  %v573_v38 = vmul.f32 %v565_v32, %v557_v31  ;;  %v3657_v62 = vld [vmem:[#allocation11 + $0x38c] ss:$16 sps:$4 sm:$0xff]   ;;  %v3655_v31 = vld [vmem:[#allocation11 + $0x388] ss:$16 sps:$4 sm:$0xff]  }
 0x152   :  { %v3660_v32 = vld [vmem:[#allocation11 + $0x16c] ss:$16 sps:$4 sm:$0xff]  }
 0x153   :  { %2236 = vmatpush1.bf16.msra.mxu0 %v3526_v39  ;;  %v3591_v39 = vld [vmem:[#allocation11 + $0x2ec] ss:$16 sps:$4 sm:$0xff]  }
 0x154   :  { %2277 = vmatpush1.bf16.msra.mxu1 %v3529_v40  ;;  %2237 = vmatprep.subr.bf16.mxu0 %v3534_v41  ;;  %v3586_v40 = vld [vmem:[#allocation11 + $0xe8] ss:$16 sps:$4 sm:$0xff]   ;;  %v4194_v41 = vpack.c.bf16 %v571_v35, %v571_v35 }
 0x155   :  { %2278 = vmatprep.subr.bf16.mxu1 %v3537_v42  ;;  %v3589_v42 = vld [vmem:[#allocation11 + $0x2e8] ss:$16 sps:$4 sm:$0xff]  }
 0x156   :  { %v3658_v35 = vld [vmem:[#allocation11 + $0x168] ss:$16 sps:$4 sm:$0xff]  }
 0x157   :  { %2238 = vmatpush1.bf16.msra.mxu0 %v3532_v43  ;;  %v4196_v43 = vpack.c.bf16 %v573_v38, %v573_v38  ;;  %v3669_v38 = vld [vmem:[#allocation11 + $0x34c] ss:$16 sps:$4 sm:$0xff]  }
 0x158   :  { %2279 = vmatpush1.bf16.msra.mxu1 %v3535_v44  ;;  %2239 = vmatprep.subr.bf16.mxu0 %v3540_v46  ;;  %v3594_v44 = vld [vmem:[#allocation11 + $0xcc] ss:$16 sps:$4 sm:$0xff]  }
 0x159   :  { %2280 = vmatprep.subr.bf16.mxu1 %v3543_v49  ;;  %v3597_v46 = vld [vmem:[#allocation11 + $0x2cc] ss:$16 sps:$4 sm:$0xff]   ;;  %v3592_v49 = vld [vmem:[#allocation11 + $0xc8] ss:$16 sps:$4 sm:$0xff]  }
 0x15b   :  { %2240 = vmatpush2.bf16.msra.mxu0 %v3538_v50  ;;  %v3595_v50 = vld [vmem:[#allocation11 + $0x2c8] ss:$16 sps:$4 sm:$0xff]  }
 0x15c   :  { %2281 = vmatpush2.bf16.msra.mxu1 %v3541_v51  ;;  %2241 = vmatprep.subr.bf16.mxu0 %v3546_v53  ;;  %v3600_v51 = vld [vmem:[#allocation11 + $0xac] ss:$16 sps:$4 sm:$0xff]  }
 0x15d   :  { %2282 = vmatprep.subr.bf16.mxu1 %v3549_v54  ;;  %v3603_v53 = vld [vmem:[#allocation11 + $0x2ac] ss:$16 sps:$4 sm:$0xff]   ;;  %v3598_v54 = vld [vmem:[#allocation11 + $0xa8] ss:$16 sps:$4 sm:$0xff]  }
 0x15f   :  { %2242 = vmatpush2.bf16.msra.mxu0 %v3544_v55  ;;  %v3601_v55 = vld [vmem:[#allocation11 + $0x2a8] ss:$16 sps:$4 sm:$0xff]  }
 0x160   :  { %2283 = vmatpush2.bf16.msra.mxu1 %v3547_v56  ;;  %2243 = vmatprep.subr.bf16.mxu0 %v3552_v57  ;;  %v3606_v56 = vld [vmem:[#allocation11 + $0x8c] ss:$16 sps:$4 sm:$0xff]  }
 0x161   :  { %2284 = vmatprep.subr.bf16.mxu1 %v3555_v58  ;;  %v3609_v57 = vld [vmem:[#allocation11 + $0x28c] ss:$16 sps:$4 sm:$0xff]   ;;  %v3604_v58 = vld [vmem:[#allocation11 + $0x88] ss:$16 sps:$4 sm:$0xff]  }
 0x163   :  { %2244 = vmatpush2.bf16.msra.mxu0 %v3550_v59  ;;  %v3612_v59 = vld [vmem:[#allocation11 + $0x6c] ss:$16 sps:$4 sm:$0xff]  }
 0x164   :  { %2285 = vmatpush2.bf16.msra.mxu1 %v3553_v61  ;;  %2245 = vmatprep.subr.bf16.mxu0 %v3558_v63  ;;  %v3615_v61 = vld [vmem:[#allocation11 + $0x26c] ss:$16 sps:$4 sm:$0xff]   ;;  %v3613_v63 = vld [vmem:[#allocation11 + $0x268] ss:$16 sps:$4 sm:$0xff]  }
 0x165   :  { %2286 = vmatprep.subr.bf16.mxu1 %v3561_v0  ;;  %v3618_v0 = vld [vmem:[#allocation11 + $0x4c] ss:$16 sps:$4 sm:$0xff]  }
 0x167   :  { %2246 = vmatpush2.bf16.msra.mxu0 %v3556_v4  ;;  %v3619_v4 = vld [vmem:[#allocation11 + $0x248] ss:$16 sps:$4 sm:$0xff]  }
 0x168   :  { %2287 = vmatpush2.bf16.msra.mxu1 %v3559_v5  ;;  %2247 = vmatprep.subr.bf16.mxu0 %v3564_v6  ;;  %v3624_v5 = vld [vmem:[#allocation11 + $0x2c] ss:$16 sps:$4 sm:$0xff]  }
 0x169   :  { %2288 = vmatprep.subr.bf16.mxu1 %v3567_v13  ;;  %v3627_v6 = vld [vmem:[#allocation11 + $0x22c] ss:$16 sps:$4 sm:$0xff]   ;;  %v3625_v13 = vld [vmem:[#allocation11 + $0x228] ss:$16 sps:$4 sm:$0xff]  }
 0x16b   :  { %2248 = vmatpush2.bf16.msra.mxu0 %v3562_v15  ;;  %v3633_v15 = vld [vmem:[#allocation11 + $0x20c] ss:$16 sps:$4 sm:$0xff]  }
 0x16c   :  { %2289 = vmatpush2.bf16.msra.mxu1 %v3565_v16  ;;  %2249 = vmatprep.subr.bf16.mxu0 %v3570_v17  ;;  %v3628_v16 = vld [vmem:[#allocation11 + $0x8] ss:$16 sps:$4 sm:$0xff]  }
 0x16d   :  { %2290 = vmatprep.subr.bf16.mxu1 %v3573_v19  ;;  %v3631_v17 = vld [vmem:[#allocation11 + $0x208] ss:$16 sps:$4 sm:$0xff]   ;;  %v3639_v19 = vld [vmem:[#allocation11 + $0x3ec] ss:$16 sps:$4 sm:$0xff]  }
 0x16f   :  { %2250 = vmatpush2.bf16.msra.mxu0 %v3568_v21  ;;  %v3637_v21 = vld [vmem:[#allocation11 + $0x3e8] ss:$16 sps:$4 sm:$0xff]  }
 0x170   :  { %2291 = vmatpush2.bf16.msra.mxu1 %v3571_v22  ;;  %2251 = vmatprep.subr.bf16.mxu0 %v3576_v23  ;;  %v3642_v22 = vld [vmem:[#allocation11 + $0x1cc] ss:$16 sps:$4 sm:$0xff]  }
 0x171   :  { %2292 = vmatprep.subr.bf16.mxu1 %v3579_v9  ;;  %v3645_v23 = vld [vmem:[#allocation11 + $0x3cc] ss:$16 sps:$4 sm:$0xff]   ;;  %v3643_v9 = vld [vmem:[#allocation11 + $0x3c8] ss:$16 sps:$4 sm:$0xff]  }
 0x173   :  { %2252 = vmatpush2.bf16.msra.mxu0 %v3574_v26  ;;  %v3651_v26 = vld [vmem:[#allocation11 + $0x3ac] ss:$16 sps:$4 sm:$0xff]  }
 0x174   :  { %2293 = vmatpush2.bf16.msra.mxu1 %v3577_v60  ;;  %2253 = vmatprep.subr.bf16.mxu0 %v3582_v27  ;;  %v3646_v60 = vld [vmem:[#allocation11 + $0x1a8] ss:$16 sps:$4 sm:$0xff]  }
 0x175   :  { %2294 = vmatprep.subr.bf16.mxu1 %v3585_v29  ;;  %v3649_v27 = vld [vmem:[#allocation11 + $0x3a8] ss:$16 sps:$4 sm:$0xff]  }
 0x176   :  { %v3652_v29 = vld [vmem:[#allocation11 + $0x188] ss:$16 sps:$4 sm:$0xff]  }
 0x177   :  { %2254 = vmatpush2.bf16.msra.mxu0 %v3580_v34  ;;  %v3663_v34 = vld [vmem:[#allocation11 + $0x36c] ss:$16 sps:$4 sm:$0xff]  }
 0x178   :  { %2295 = vmatpush2.bf16.msra.mxu1 %v3583_v36  ;;  %2305 = vmatprep.subr.bf16.mxu0 %v3588_v37  ;;  %v3661_v36 = vld [vmem:[#allocation11 + $0x368] ss:$16 sps:$4 sm:$0xff]   ;;  %v3666_v37 = vld [vmem:[#allocation11 + $0x14c] ss:$16 sps:$4 sm:$0xff]  }
 0x179   :  { %2346 = vmatprep.subr.bf16.mxu1 %v3591_v39  ;;  %v3664_v39 = vld [vmem:[#allocation11 + $0x148] ss:$16 sps:$4 sm:$0xff]  }
 0x17a   :  { %2256 = vmatmul.mubr.bf16.vlgmr.msra.gmra.mxu0 %v4194_v41 }
 0x17b   :  { %2297 = vmatmul.mubr.bf16.vlgmr.msra.gmra.mxu1 %v4196_v43  ;;  %2306 = vmatpush1.bf16.msra.mxu0 %v3586_v40  ;;  %v3667_v40 = vld [vmem:[#allocation11 + $0x348] ss:$16 sps:$4 sm:$0xff]  }
 0x17c   :  { %2337 = vmatprep.mubr.bf16.mxu0 %v4162_v45  ;;  %2347 = vmatpush1.bf16.msra.mxu1 %v3589_v42  ;;  %v3607_v45 = vld [vmem:[#allocation11 + $0x288] ss:$16 sps:$4 sm:$0xff]   ;;  %v3672_v42 = vld [vmem:[#allocation11 + $0x12c] ss:$16 sps:$4 sm:$0xff]  }
 0x17d   :  { %2378 = vmatprep.mubr.bf16.mxu1 %v4166_v48  ;;  %2307 = vmatprep.subr.bf16.mxu0 %v3594_v44  ;;  %v3610_v48 = vld [vmem:[#allocation11 + $0x68] ss:$16 sps:$4 sm:$0xff]   ;;  %v3675_v44 = vld [vmem:[#allocation11 + $0x32c] ss:$16 sps:$4 sm:$0xff]  }
 0x17e   :  { %2348 = vmatprep.subr.bf16.mxu1 %v3597_v46  ;;  %v3670_v46 = vld [vmem:[#allocation11 + $0x128] ss:$16 sps:$4 sm:$0xff]  }
 0x17f   :  { %2308 = vmatpush1.bf16.msra.mxu0 %v3592_v49  ;;  %v3673_v49 = vld [vmem:[#allocation11 + $0x328] ss:$16 sps:$4 sm:$0xff]  }
 0x180   :  { %2349 = vmatpush1.bf16.msra.mxu1 %v3595_v50  ;;  %2309 = vmatprep.subr.bf16.mxu0 %v3600_v51  ;;  %v3678_v50 = vld [vmem:[#allocation11 + $0x10c] ss:$16 sps:$4 sm:$0xff]  }
 0x181   :  { %2350 = vmatprep.subr.bf16.mxu1 %v3603_v53  ;;  %v3681_v51 = vld [vmem:[#allocation11 + $0x30c] ss:$16 sps:$4 sm:$0xff]   ;;  %v3676_v53 = vld [vmem:[#allocation11 + $0x108] ss:$16 sps:$4 sm:$0xff]  }
 0x183   :  { %2310 = vmatpush1.bf16.msra.mxu0 %v3598_v54  ;;  %v3679_v54 = vld [vmem:[#allocation11 + $0x308] ss:$16 sps:$4 sm:$0xff]  }
 0x184   :  { %2351 = vmatpush1.bf16.msra.mxu1 %v3601_v55  ;;  %2311 = vmatprep.subr.bf16.mxu0 %v3606_v56  ;;  %v3684_v55 = vld [vmem:[#allocation11 + $0x4ec] ss:$16 sps:$4 sm:$0xff]  }
 0x185   :  { %2352 = vmatprep.subr.bf16.mxu1 %v3609_v57  ;;  %v3687_v56 = vld [vmem:[#allocation11 + $0x6ec] ss:$16 sps:$4 sm:$0xff]   ;;  %v3682_v57 = vld [vmem:[#allocation11 + $0x4e8] ss:$16 sps:$4 sm:$0xff]  }
 0x187   :  { %2312 = vmatpush1.bf16.msra.mxu0 %v3604_v58  ;;  %v3685_v58 = vld [vmem:[#allocation11 + $0x6e8] ss:$16 sps:$4 sm:$0xff]  }
 0x188   :  { %2353 = vmatpush1.bf16.msra.mxu1 %v3607_v45  ;;  %2313 = vmatprep.subr.bf16.mxu0 %v3612_v59  ;;  %v3690_v45 = vld [vmem:[#allocation11 + $0x4cc] ss:$16 sps:$4 sm:$0xff]  }
 0x189   :  { %2354 = vmatprep.subr.bf16.mxu1 %v3615_v61  ;;  %v3693_v59 = vld [vmem:[#allocation11 + $0x6cc] ss:$16 sps:$4 sm:$0xff]   ;;  %v3688_v61 = vld [vmem:[#allocation11 + $0x4c8] ss:$16 sps:$4 sm:$0xff]  }
 0x18b   :  { %2314 = vmatpush1.bf16.msra.mxu0 %v3610_v48  ;;  %v3691_v48 = vld [vmem:[#allocation11 + $0x6c8] ss:$16 sps:$4 sm:$0xff]  }
 0x18c   :  { %2355 = vmatpush1.bf16.msra.mxu1 %v3613_v63  ;;  %2315 = vmatprep.subr.bf16.mxu0 %v3618_v0  ;;  %v3696_v63 = vld [vmem:[#allocation11 + $0x4ac] ss:$16 sps:$4 sm:$0xff]  }
 0x18d   :  { %2356 = vmatprep.subr.bf16.mxu1 %v3621_v2  ;;  %v3699_v0 = vld [vmem:[#allocation11 + $0x6ac] ss:$16 sps:$4 sm:$0xff]   ;;  %v3694_v2 = vld [vmem:[#allocation11 + $0x4a8] ss:$16 sps:$4 sm:$0xff]  }
 0x18f   :  { %2316 = vmatpush1.bf16.msra.mxu0 %v3616_v3  ;;  %v3702_v3 = vld [vmem:[#allocation11 + $0x48c] ss:$16 sps:$4 sm:$0xff]  }
 0x190   :  { %2357 = vmatpush1.bf16.msra.mxu1 %v3619_v4  ;;  %2317 = vmatprep.subr.bf16.mxu0 %v3624_v5  ;;  %v3700_v4 = vld [vmem:[#allocation11 + $0x488] ss:$16 sps:$4 sm:$0xff]   ;;  %v3708_v5 = vld [vmem:[#allocation11 + $0x46c] ss:$16 sps:$4 sm:$0xff]  }
 0x191   :  { %2358 = vmatprep.subr.bf16.mxu1 %v3627_v6  ;;  %v3711_v6 = vld [vmem:[#allocation11 + $0x66c] ss:$16 sps:$4 sm:$0xff]  }
 0x193   :  { %2318 = vmatpush1.bf16.msra.mxu0 %v3622_v7  ;;  %v3709_v7 = vld [vmem:[#allocation11 + $0x668] ss:$16 sps:$4 sm:$0xff]  }
 0x194   :  { %2359 = vmatpush1.bf16.msra.mxu1 %v3625_v13  ;;  %2319 = vmatprep.subr.bf16.mxu0 %v3630_v14  ;;  %v3714_v13 = vld [vmem:[#allocation11 + $0x44c] ss:$16 sps:$4 sm:$0xff]  }
 0x195   :  { %2360 = vmatprep.subr.bf16.mxu1 %v3633_v15  ;;  %v3717_v14 = vld [vmem:[#allocation11 + $0x64c] ss:$16 sps:$4 sm:$0xff]   ;;  %v3712_v15 = vld [vmem:[#allocation11 + $0x448] ss:$16 sps:$4 sm:$0xff]  }
 0x197   :  { %2320 = vmatpush1.bf16.msra.mxu0 %v3628_v16  ;;  %v3715_v16 = vld [vmem:[#allocation11 + $0x648] ss:$16 sps:$4 sm:$0xff]  }
 0x198   :  { %2361 = vmatpush1.bf16.msra.mxu1 %v3631_v17  ;;  %2321 = vmatprep.subr.bf16.mxu0 %v3636_v18  ;;  %v3720_v17 = vld [vmem:[#allocation11 + $0x42c] ss:$16 sps:$4 sm:$0xff]  }
 0x199   :  { %2362 = vmatprep.subr.bf16.mxu1 %v3639_v19  ;;  %v3723_v18 = vld [vmem:[#allocation11 + $0x62c] ss:$16 sps:$4 sm:$0xff]   ;;  %v3718_v19 = vld [vmem:[#allocation11 + $0x428] ss:$16 sps:$4 sm:$0xff]  }
 0x19b   :  { %2322 = vmatpush2.bf16.msra.mxu0 %v3634_v20  ;;  %v3721_v20 = vld [vmem:[#allocation11 + $0x628] ss:$16 sps:$4 sm:$0xff]  }
 0x19c   :  { %2363 = vmatpush2.bf16.msra.mxu1 %v3637_v21  ;;  %2323 = vmatprep.subr.bf16.mxu0 %v3642_v22  ;;  %v3726_v21 = vld [vmem:[#allocation11 + $0x40c] ss:$16 sps:$4 sm:$0xff]  }
 0x19d   :  { %2364 = vmatprep.subr.bf16.mxu1 %v3645_v23  ;;  %v3729_v22 = vld [vmem:[#allocation11 + $0x60c] ss:$16 sps:$4 sm:$0xff]   ;;  %v3724_v23 = vld [vmem:[#allocation11 + $0x408] ss:$16 sps:$4 sm:$0xff]  }
 0x19f   :  { %2324 = vmatpush2.bf16.msra.mxu0 %v3640_v24  ;;  %v3727_v24 = vld [vmem:[#allocation11 + $0x608] ss:$16 sps:$4 sm:$0xff]  }
 0x1a0   :  { %2365 = vmatpush2.bf16.msra.mxu1 %v3643_v9  ;;  %2325 = vmatprep.subr.bf16.mxu0 %v3648_v25  ;;  %v3732_v9 = vld [vmem:[#allocation11 + $0x5ec] ss:$16 sps:$4 sm:$0xff]  }
 0x1a1   :  { %2366 = vmatprep.subr.bf16.mxu1 %v3651_v26  ;;  %v3735_v25 = vld [vmem:[#allocation11 + $0x7ec] ss:$16 sps:$4 sm:$0xff]   ;;  %v3730_v26 = vld [vmem:[#allocation11 + $0x5e8] ss:$16 sps:$4 sm:$0xff]  }
 0x1a3   :  { %2326 = vmatpush2.bf16.msra.mxu0 %v3646_v60  ;;  %v3733_v60 = vld [vmem:[#allocation11 + $0x7e8] ss:$16 sps:$4 sm:$0xff]  }
 0x1a4   :  { %2367 = vmatpush2.bf16.msra.mxu1 %v3649_v27  ;;  %2327 = vmatprep.subr.bf16.mxu0 %v3654_v28  ;;  %v3738_v27 = vld [vmem:[#allocation11 + $0x5cc] ss:$16 sps:$4 sm:$0xff]  }
 0x1a5   :  { %2368 = vmatprep.subr.bf16.mxu1 %v3657_v62  ;;  %v3741_v28 = vld [vmem:[#allocation11 + $0x7cc] ss:$16 sps:$4 sm:$0xff]   ;;  %v3736_v62 = vld [vmem:[#allocation11 + $0x5c8] ss:$16 sps:$4 sm:$0xff]  }
 0x1a7   :  { %2328 = vmatpush2.bf16.msra.mxu0 %v3652_v29  ;;  %v3739_v29 = vld [vmem:[#allocation11 + $0x7c8] ss:$16 sps:$4 sm:$0xff]  }
 0x1a8   :  { %2369 = vmatpush2.bf16.msra.mxu1 %v3655_v31  ;;  %2329 = vmatprep.subr.bf16.mxu0 %v3660_v32  ;;  %v3744_v31 = vld [vmem:[#allocation11 + $0x5ac] ss:$16 sps:$4 sm:$0xff]  }
 0x1a9   :  { %2370 = vmatprep.subr.bf16.mxu1 %v3663_v34  ;;  %v3747_v32 = vld [vmem:[#allocation11 + $0x7ac] ss:$16 sps:$4 sm:$0xff]   ;;  %v3742_v34 = vld [vmem:[#allocation11 + $0x5a8] ss:$16 sps:$4 sm:$0xff]  }
 0x1ab   :  { %2330 = vmatpush2.bf16.msra.mxu0 %v3658_v35  ;;  %v3745_v35 = vld [vmem:[#allocation11 + $0x7a8] ss:$16 sps:$4 sm:$0xff]  }
 0x1ac   :  { %2371 = vmatpush2.bf16.msra.mxu1 %v3661_v36  ;;  %2331 = vmatprep.subr.bf16.mxu0 %v3666_v37  ;;  %v3750_v36 = vld [vmem:[#allocation11 + $0x58c] ss:$16 sps:$4 sm:$0xff]  }
 0x1ad   :  { %2372 = vmatprep.subr.bf16.mxu1 %v3669_v38  ;;  %v3753_v37 = vld [vmem:[#allocation11 + $0x78c] ss:$16 sps:$4 sm:$0xff]   ;;  %v3748_v38 = vld [vmem:[#allocation11 + $0x588] ss:$16 sps:$4 sm:$0xff]  }
 0x1af   :  { %2332 = vmatpush2.bf16.msra.mxu0 %v3664_v39  ;;  %v3751_v39 = vld [vmem:[#allocation11 + $0x788] ss:$16 sps:$4 sm:$0xff]  }
 0x1b0   :  { %2373 = vmatpush2.bf16.msra.mxu1 %v3667_v40  ;;  %2333 = vmatprep.subr.bf16.mxu0 %v3672_v42  ;;  %v3756_v40 = vld [vmem:[#allocation11 + $0x56c] ss:$16 sps:$4 sm:$0xff]  }
 0x1b1   :  { %2374 = vmatprep.subr.bf16.mxu1 %v3675_v44  ;;  %v3759_v42 = vld [vmem:[#allocation11 + $0x76c] ss:$16 sps:$4 sm:$0xff]   ;;  %v3754_v44 = vld [vmem:[#allocation11 + $0x568] ss:$16 sps:$4 sm:$0xff]  }
 0x1b3   :  { %2334 = vmatpush2.bf16.msra.mxu0 %v3670_v46  ;;  %v3757_v46 = vld [vmem:[#allocation11 + $0x768] ss:$16 sps:$4 sm:$0xff]  }
 0x1b4   :  { %2375 = vmatpush2.bf16.msra.mxu1 %v3673_v49  ;;  %2335 = vmatprep.subr.bf16.mxu0 %v3678_v50  ;;  %v3762_v49 = vld [vmem:[#allocation11 + $0x54c] ss:$16 sps:$4 sm:$0xff]  }
 0x1b5   :  { %2376 = vmatprep.subr.bf16.mxu1 %v3681_v51  ;;  %v3765_v50 = vld [vmem:[#allocation11 + $0x74c] ss:$16 sps:$4 sm:$0xff]   ;;  %v3760_v51 = vld [vmem:[#allocation11 + $0x548] ss:$16 sps:$4 sm:$0xff]  }
 0x1b7   :  { %2336 = vmatpush2.bf16.msra.mxu0 %v3676_v53  ;;  %v3763_v53 = vld [vmem:[#allocation11 + $0x748] ss:$16 sps:$4 sm:$0xff]  }
 0x1b8   :  { %2377 = vmatpush2.bf16.msra.mxu1 %v3679_v54  ;;  %2387 = vmatprep.subr.bf16.mxu0 %v3684_v55  ;;  %v3768_v54 = vld [vmem:[#allocation11 + $0x52c] ss:$16 sps:$4 sm:$0xff]  }
 0x1b9   :  { %2428 = vmatprep.subr.bf16.mxu1 %v3687_v56  ;;  %v3771_v55 = vld [vmem:[#allocation11 + $0x72c] ss:$16 sps:$4 sm:$0xff]   ;;  %v3766_v56 = vld [vmem:[#allocation11 + $0x528] ss:$16 sps:$4 sm:$0xff]  }
 0x1ba   :  { %2338 = vmatmul.mubr.bf16.vlgmr.msra.gmra.mxu0 %v4164_v47  ;;  %v3697_v47 = vld [vmem:[#allocation11 + $0x6a8] ss:$16 sps:$4 sm:$0xff]  }
 0x1bb   :  { %2379 = vmatmul.mubr.bf16.vlgmr.msra.gmra.mxu1 %v4169_v52  ;;  %2388 = vmatpush1.bf16.msra.mxu0 %v3682_v57  ;;  %v3705_v52 = vld [vmem:[#allocation11 + $0x68c] ss:$16 sps:$4 sm:$0xff]   ;;  %v3769_v57 = vld [vmem:[#allocation11 + $0x728] ss:$16 sps:$4 sm:$0xff]  }
 0x1bc   :  { %2419 = vmatprep.mubr.bf16.mxu0 %v4182_v30  ;;  %2429 = vmatpush1.bf16.msra.mxu1 %v3685_v58  ;;  %v3703_v30 = vld [vmem:[#allocation11 + $0x688] ss:$16 sps:$4 sm:$0xff]   ;;  %v3774_v58 = vld [vmem:[#allocation11 + $0x50c] ss:$16 sps:$4 sm:$0xff]  }
 0x1bd   :  { %2460 = vmatprep.mubr.bf16.mxu1 %v4184_v33  ;;  %2389 = vmatprep.subr.bf16.mxu0 %v3690_v45  ;;  %v3706_v33 = vld [vmem:[#allocation11 + $0x468] ss:$16 sps:$4 sm:$0xff]   ;;  %v3777_v45 = vld [vmem:[#allocation11 + $0x70c] ss:$16 sps:$4 sm:$0xff]  }
 0x1be   :  { %2430 = vmatprep.subr.bf16.mxu1 %v3693_v59  ;;  %v3772_v59 = vld [vmem:[#allocation11 + $0x508] ss:$16 sps:$4 sm:$0xff]  }
 0x1bf   :  { %2390 = vmatpush1.bf16.msra.mxu0 %v3688_v61  ;;  %v3775_v61 = vld [vmem:[#allocation11 + $0x708] ss:$16 sps:$4 sm:$0xff]  }
 0x1c0   :  { %2431 = vmatpush1.bf16.msra.mxu1 %v3691_v48  ;;  %2391 = vmatprep.subr.bf16.mxu0 %v3696_v63  ;;  %v3780_v48 = vld [vmem:[#allocation13 + $0x74] ss:$8 sps:$4 sm:$0xff]   ;;  %v3778_v63 = vld [vmem:[#allocation13 + $0x70] ss:$8 sps:$4 sm:$0xff]  }
 0x1c1   :  { %2432 = vmatprep.subr.bf16.mxu1 %v3699_v0  ;;  %v3783_v0 = vld [vmem:[#allocation13 + $0x64] ss:$8 sps:$4 sm:$0xff]  }
 0x1c3   :  { %2392 = vmatpush1.bf16.msra.mxu0 %v3694_v2 }
 0x1c4   :  { %2433 = vmatpush1.bf16.msra.mxu1 %v3697_v47  ;;  %2393 = vmatprep.subr.bf16.mxu0 %v3702_v3  ;;  %v3781_v3 = vld [vmem:[#allocation13 + $0x60] ss:$8 sps:$4 sm:$0xff]  }
 0x1c5   :  { %2434 = vmatprep.subr.bf16.mxu1 %v3705_v52 }
 0x1c7   :  { %2394 = vmatpush1.bf16.msra.mxu0 %v3700_v4  ;;  %v3786_v4 = vld [vmem:[#allocation13 + $0x54] ss:$8 sps:$4 sm:$0xff]  }
 0x1c8   :  { %2435 = vmatpush1.bf16.msra.mxu1 %v3703_v30  ;;  %2395 = vmatprep.subr.bf16.mxu0 %v3708_v5 }
 0x1c9   :  { %2436 = vmatprep.subr.bf16.mxu1 %v3711_v6 }
 0x1cb   :  { %2396 = vmatpush1.bf16.msra.mxu0 %v3706_v33  ;;  %v3784_v33 = vld [vmem:[#allocation13 + $0x50] ss:$8 sps:$4 sm:$0xff]  }
 0x1cc   :  { %2437 = vmatpush1.bf16.msra.mxu1 %v3709_v7  ;;  %2397 = vmatprep.subr.bf16.mxu0 %v3714_v13 }
 0x1cd   :  { %2438 = vmatprep.subr.bf16.mxu1 %v3717_v14  ;;  %v3826_v14 = vld [vmem:[#allocation13 + $0x170] ss:$8 sps:$4 sm:$0xff]  }
 0x1cf   :  { %2398 = vmatpush1.bf16.msra.mxu0 %v3712_v15  ;;  %v3831_v15 = vld [vmem:[#allocation13 + $0x164] ss:$8 sps:$4 sm:$0xff]  }
 0x1d0   :  { %2439 = vmatpush1.bf16.msra.mxu1 %v3715_v16  ;;  %2399 = vmatprep.subr.bf16.mxu0 %v3720_v17  ;;  %v3787_v16 = vld [vmem:[#allocation13 + $0x40] ss:$8 sps:$4 sm:$0xff]   ;;  %v3792_v17 = vld [vmem:[#allocation13 + $0x34] ss:$8 sps:$4 sm:$0xff]  }
 0x1d1   :  { %2440 = vmatprep.subr.bf16.mxu1 %v3723_v18  ;;  %v3829_v18 = vld [vmem:[#allocation13 + $0x160] ss:$8 sps:$4 sm:$0xff]  }
 0x1d3   :  { %2400 = vmatpush1.bf16.msra.mxu0 %v3718_v19  ;;  %v3834_v19 = vld [vmem:[#allocation13 + $0x154] ss:$8 sps:$4 sm:$0xff]  }
 0x1d4   :  { %2441 = vmatpush1.bf16.msra.mxu1 %v3721_v20  ;;  %2401 = vmatprep.subr.bf16.mxu0 %v3726_v21  ;;  %v3790_v20 = vld [vmem:[#allocation13 + $0x30] ss:$8 sps:$4 sm:$0xff]   ;;  %v3795_v21 = vld [vmem:[#allocation13 + $0x24] ss:$8 sps:$4 sm:$0xff]  }
 0x1d5   :  { %2442 = vmatprep.subr.bf16.mxu1 %v3729_v22  ;;  %v3832_v22 = vld [vmem:[#allocation13 + $0x150] ss:$8 sps:$4 sm:$0xff]  }
 0x1d7   :  { %2402 = vmatpush1.bf16.msra.mxu0 %v3724_v23  ;;  %v3837_v23 = vld [vmem:[#allocation13 + $0x144] ss:$8 sps:$4 sm:$0xff]  }
 0x1d8   :  { %2443 = vmatpush1.bf16.msra.mxu1 %v3727_v24  ;;  %2403 = vmatprep.subr.bf16.mxu0 %v3732_v9  ;;  %v3793_v24 = vld [vmem:[#allocation13 + $0x20] ss:$8 sps:$4 sm:$0xff]   ;;  %v3798_v9 = vld [vmem:[#allocation13 + $0x14] ss:$8 sps:$4 sm:$0xff]  }
 0x1d9   :  { %2444 = vmatprep.subr.bf16.mxu1 %v3735_v25  ;;  %v3835_v25 = vld [vmem:[#allocation13 + $0x140] ss:$8 sps:$4 sm:$0xff]  }
 0x1db   :  { %2404 = vmatpush2.bf16.msra.mxu0 %v3730_v26  ;;  %v3840_v26 = vld [vmem:[#allocation13 + $0x134] ss:$8 sps:$4 sm:$0xff]  }
 0x1dc   :  { %2445 = vmatpush2.bf16.msra.mxu1 %v3733_v60  ;;  %2405 = vmatprep.subr.bf16.mxu0 %v3738_v27  ;;  %v3796_v60 = vld [vmem:[#allocation13 + $0x10] ss:$8 sps:$4 sm:$0xff]   ;;  %v3801_v27 = vld [vmem:[#allocation13 + $0x4] ss:$8 sps:$4 sm:$0xff]  }
 0x1dd   :  { %2446 = vmatprep.subr.bf16.mxu1 %v3741_v28  ;;  %v3838_v28 = vld [vmem:[#allocation13 + $0x130] ss:$8 sps:$4 sm:$0xff]  }
 0x1df   :  { %2406 = vmatpush2.bf16.msra.mxu0 %v3736_v62  ;;  %v3843_v62 = vld [vmem:[#allocation13 + $0x124] ss:$8 sps:$4 sm:$0xff]  }
 0x1e0   :  { %2447 = vmatpush2.bf16.msra.mxu1 %v3739_v29  ;;  %2407 = vmatprep.subr.bf16.mxu0 %v3744_v31  ;;  %v3799_v29 = vld [vmem:[#allocation13] ss:$8 sps:$4 sm:$0xff]   ;;  %v3804_v31 = vld [vmem:[#allocation13 + $0xf4] ss:$8 sps:$4 sm:$0xff]  }
 0x1e1   :  { %2448 = vmatprep.subr.bf16.mxu1 %v3747_v32  ;;  %v3841_v32 = vld [vmem:[#allocation13 + $0x120] ss:$8 sps:$4 sm:$0xff]  }
 0x1e3   :  { %2408 = vmatpush2.bf16.msra.mxu0 %v3742_v34  ;;  %v3846_v34 = vld [vmem:[#allocation13 + $0x114] ss:$8 sps:$4 sm:$0xff]  }
 0x1e4   :  { %2449 = vmatpush2.bf16.msra.mxu1 %v3745_v35  ;;  %2409 = vmatprep.subr.bf16.mxu0 %v3750_v36  ;;  %v3802_v35 = vld [vmem:[#allocation13 + $0xf0] ss:$8 sps:$4 sm:$0xff]   ;;  %v3807_v36 = vld [vmem:[#allocation13 + $0xe4] ss:$8 sps:$4 sm:$0xff]  }
 0x1e5   :  { %2450 = vmatprep.subr.bf16.mxu1 %v3753_v37  ;;  %v3844_v37 = vld [vmem:[#allocation13 + $0x110] ss:$8 sps:$4 sm:$0xff]  }
 0x1e7   :  { %2410 = vmatpush2.bf16.msra.mxu0 %v3748_v38  ;;  %v3849_v38 = vld [vmem:[#allocation13 + $0x104] ss:$8 sps:$4 sm:$0xff]  }
 0x1e8   :  { %2451 = vmatpush2.bf16.msra.mxu1 %v3751_v39  ;;  %2411 = vmatprep.subr.bf16.mxu0 %v3756_v40  ;;  %v3805_v39 = vld [vmem:[#allocation13 + $0xe0] ss:$8 sps:$4 sm:$0xff]   ;;  %v3810_v40 = vld [vmem:[#allocation13 + $0xd4] ss:$8 sps:$4 sm:$0xff]  }
 0x1e9   :  { %2452 = vmatprep.subr.bf16.mxu1 %v3759_v42  ;;  %v3847_v42 = vld [vmem:[#allocation13 + $0x100] ss:$8 sps:$4 sm:$0xff]  }
 0x1eb   :  { %2412 = vmatpush2.bf16.msra.mxu0 %v3754_v44  ;;  %v3852_v44 = vld [vmem:[#allocation13 + $0x1f4] ss:$8 sps:$4 sm:$0xff]  }
 0x1ec   :  { %2453 = vmatpush2.bf16.msra.mxu1 %v3757_v46  ;;  %2413 = vmatprep.subr.bf16.mxu0 %v3762_v49  ;;  %v3808_v46 = vld [vmem:[#allocation13 + $0xd0] ss:$8 sps:$4 sm:$0xff]   ;;  %v3813_v49 = vld [vmem:[#allocation13 + $0xc4] ss:$8 sps:$4 sm:$0xff]  }
 0x1ed   :  { %2454 = vmatprep.subr.bf16.mxu1 %v3765_v50  ;;  %v3850_v50 = vld [vmem:[#allocation13 + $0x1f0] ss:$8 sps:$4 sm:$0xff]  }
 0x1ef   :  { %2414 = vmatpush2.bf16.msra.mxu0 %v3760_v51  ;;  %v3855_v51 = vld [vmem:[#allocation13 + $0x1e4] ss:$8 sps:$4 sm:$0xff]  }
 0x1f0   :  { %2455 = vmatpush2.bf16.msra.mxu1 %v3763_v53  ;;  %2415 = vmatprep.subr.bf16.mxu0 %v3768_v54  ;;  %v3811_v53 = vld [vmem:[#allocation13 + $0xc0] ss:$8 sps:$4 sm:$0xff]   ;;  %v3816_v54 = vld [vmem:[#allocation13 + $0xb4] ss:$8 sps:$4 sm:$0xff]  }
 0x1f1   :  { %2456 = vmatprep.subr.bf16.mxu1 %v3771_v55  ;;  %v3853_v55 = vld [vmem:[#allocation13 + $0x1e0] ss:$8 sps:$4 sm:$0xff]  }
 0x1f3   :  { %2416 = vmatpush2.bf16.msra.mxu0 %v3766_v56  ;;  %v3858_v56 = vld [vmem:[#allocation13 + $0x1d4] ss:$8 sps:$4 sm:$0xff]  }
 0x1f4   :  { %2457 = vmatpush2.bf16.msra.mxu1 %v3769_v57  ;;  %2417 = vmatprep.subr.bf16.mxu0 %v3774_v58  ;;  %v3814_v57 = vld [vmem:[#allocation13 + $0xb0] ss:$8 sps:$4 sm:$0xff]   ;;  %v3819_v58 = vld [vmem:[#allocation13 + $0xa4] ss:$8 sps:$4 sm:$0xff]  }
 0x1f5   :  { %2458 = vmatprep.subr.bf16.mxu1 %v3777_v45  ;;  %v3856_v45 = vld [vmem:[#allocation13 + $0x1d0] ss:$8 sps:$4 sm:$0xff]  }
 0x1f7   :  { %2418 = vmatpush2.bf16.msra.mxu0 %v3772_v59  ;;  %v3861_v59 = vld [vmem:[#allocation13 + $0x1c4] ss:$8 sps:$4 sm:$0xff]  }
 0x1f8   :  { %2459 = vmatpush2.bf16.msra.mxu1 %v3775_v61  ;;  %2889 = vmatprep.subr.bf16.mxu0 %v3780_v48  ;;  %v3817_v61 = vld [vmem:[#allocation13 + $0xa0] ss:$8 sps:$4 sm:$0xff]   ;;  %v3822_v48 = vld [vmem:[#allocation13 + $0x94] ss:$8 sps:$4 sm:$0xff]  }
 0x1fa   :  { %2420 = vmatmul.mubr.bf16.vlgmr.msra.gmra.mxu0 %v4194_v41  ;;  %v4207_v2 = vpop.f32.mrf.mxu0  ;;  %v3789_v41 = vld [vmem:[#allocation13 + $0x44] ss:$8 sps:$4 sm:$0xff]  }
 0x1fb   :  { %2461 = vmatmul.mubr.bf16.vlgmr.msra.gmra.mxu1 %v4196_v43  ;;  %v4210_v47 = vpop.f32.mrf.mxu1  ;;  %2890 = vmatpush1.bf16.msra.mxu0 %v3778_v63  ;;  %v3828_v43 = vld [vmem:[#allocation13 + $0x174] ss:$8 sps:$4 sm:$0xff]   ;;  %v3859_v63 = vld [vmem:[#allocation13 + $0x1c0] ss:$8 sps:$4 sm:$0xff]  }
 0x1fc   :  { %v4212_v52 = vpop.f32.mrf.mxu0  ;;  %2891 = vmatprep.subr.bf16.mxu0 %v3783_v0  ;;  %2930 = vmatprep.subr.bf16.mxu1 %v3828_v43  ;;  %v3864_v0 = vld [vmem:[#allocation13 + $0x1b4] ss:$8 sps:$4 sm:$0xff]  }
 0x1fd   :  { %v4214_v30 = vpop.f32.mrf.mxu1  ;;  %2931 = vmatpush1.bf16.msra.mxu1 %v3826_v14 }
 0x1fe   :  { %v2179_v5 = vpop.f32.mrf.mxu0  ;;  %2932 = vmatprep.subr.bf16.mxu1 %v3831_v15 }
 0x1ff   :  { %v2220_v6 = vpop.f32.mrf.mxu1  ;;  %2892 = vmatpush1.bf16.msra.mxu0 %v3781_v3  ;;  %v4219_v3 = vld [vmem:[%s4255_s7] sm:$0xf] }
 0x200   :  { %v2180_v7 = vpop.f32.mrf.mxu0  ;;  %2893 = vmatprep.subr.bf16.mxu0 %v3786_v4  ;;  %v3820_v4 = vld [vmem:[#allocation13 + $0x90] ss:$8 sps:$4 sm:$0xff]   ;;  %v3825_v5 = vld [vmem:[#allocation13 + $0x84] ss:$8 sps:$4 sm:$0xff]  }
 0x201   :  { %v2221_v13 = vpop.f32.mrf.mxu1  ;;  %2933 = vmatpush1.bf16.msra.mxu1 %v3829_v18  ;;  %v3862_v6 = vld [vmem:[#allocation13 + $0x1b0] ss:$8 sps:$4 sm:$0xff]   ;;  %v848_v7 = vrot.slane %v4219_v3, %v4149_v11 }
 0x202   :  { %2934 = vmatprep.subr.bf16.mxu1 %v3834_v19 }
 0x203   :  { %2894 = vmatpush1.bf16.msra.mxu0 %v3784_v33  ;;  %v844_v33 = vrot.slane %v4219_v3, %v4140_v8  ;;  %v2178_v14 = vadd.f32 %v4212_v52, %v848_v7  ;;  %v2481_v52 = vld [vmem:[#allocation7] sm:$0xff]  ;;  %v2483_v7 = vld [vmem:[#allocation7 + $0x10] sm:$0xff] }
 0x204   :  { %2895 = vmatprep.subr.bf16.mxu0 %v3789_v41  ;;  %v3823_v41 = vld [vmem:[#allocation13 + $0x80] ss:$8 sps:$4 sm:$0xff]  }
 0x205   :  { %2935 = vmatpush1.bf16.msra.mxu1 %v3832_v22  ;;  %v2176_v13 = vadd.f32 %v4207_v2, %v844_v33 }
 0x206   :  { %2936 = vmatprep.subr.bf16.mxu1 %v3837_v23  ;;  %v3867_v23 = vld [vmem:[#allocation13 + $0x1a4] ss:$8 sps:$4 sm:$0xff]  }
 0x207   :  { %2896 = vmatpush1.bf16.msra.mxu0 %v3787_v16  ;;  %v2217_v43 = vadd.f32 %v4210_v47, %v2176_v13  ;;  %v2219_v16 = vadd.f32 %v4214_v30, %v2178_v14  ;;  %v2484_v13 = vld [vmem:[#allocation7 + $0x18] sm:$0xff] }
 0x208   :  { %2897 = vmatprep.subr.bf16.mxu0 %v3792_v17 }
 0x209   :  { %2937 = vmatpush1.bf16.msra.mxu1 %v3835_v25 }
 0x20a   :  { %2938 = vmatprep.subr.bf16.mxu1 %v3840_v26 }
 0x20b   :  { %2898 = vmatpush1.bf16.msra.mxu0 %v3790_v20 }
 0x20c   :  { %2899 = vmatprep.subr.bf16.mxu0 %v3795_v21 }
 0x20d   :  { %2939 = vmatpush1.bf16.msra.mxu1 %v3838_v28  ;;  %v2482_v28 = vld [vmem:[#allocation7 + $0x8] sm:$0xff] }
 0x20e   :  { %2940 = vmatprep.subr.bf16.mxu1 %v3843_v62  ;;  %v3870_v62 = vld [vmem:[#allocation13 + $0x194] ss:$8 sps:$4 sm:$0xff]  }
 0x20f   :  { %2900 = vmatpush1.bf16.msra.mxu0 %v3793_v24 }
 0x210   :  { %2901 = vmatprep.subr.bf16.mxu0 %v3798_v9  ;;  %v3865_v9 = vld [vmem:[#allocation13 + $0x1a0] ss:$8 sps:$4 sm:$0xff]  }
 0x211   :  { %2941 = vmatpush1.bf16.msra.mxu1 %v3841_v32 }
 0x212   :  { %2942 = vmatprep.subr.bf16.mxu1 %v3846_v34 }
 0x213   :  { %2902 = vmatpush1.bf16.msra.mxu0 %v3796_v60 }
 0x214   :  { %2903 = vmatprep.subr.bf16.mxu0 %v3801_v27 }
 0x215   :  { %2943 = vmatpush1.bf16.msra.mxu1 %v3844_v37 }
 0x216   :  { %2944 = vmatprep.subr.bf16.mxu1 %v3849_v38 }
 0x217   :  { %2904 = vmatpush1.bf16.msra.mxu0 %v3799_v29  ;;  %v3868_v29 = vld [vmem:[#allocation13 + $0x190] ss:$8 sps:$4 sm:$0xff]  }
 0x218   :  { %2905 = vmatprep.subr.bf16.mxu0 %v3804_v31 }
 0x219   :  { %2945 = vmatpush1.bf16.msra.mxu1 %v3847_v42 }
 0x21a   :  { %2946 = vmatprep.subr.bf16.mxu1 %v3852_v44 }
 0x21b   :  { %2906 = vmatpush2.bf16.msra.mxu0 %v3802_v35  ;;  %v3871_v35 = vld [vmem:[#allocation13 + $0x180] ss:$8 sps:$4 sm:$0xff]  }
 0x21c   :  { %2907 = vmatprep.subr.bf16.mxu0 %v3807_v36  ;;  %v3873_v36 = vld [vmem:[#allocation13 + $0x184] ss:$8 sps:$4 sm:$0xff]  }
 0x21d   :  { %2947 = vmatpush2.bf16.msra.mxu1 %v3850_v50 }
 0x21e   :  { %2948 = vmatprep.subr.bf16.mxu1 %v3855_v51 }
 0x21f   :  { %2908 = vmatpush2.bf16.msra.mxu0 %v3805_v39 }
 0x220   :  { %2909 = vmatprep.subr.bf16.mxu0 %v3810_v40 }
 0x221   :  { %2949 = vmatpush2.bf16.msra.mxu1 %v3853_v55 }
 0x222   :  { %2950 = vmatprep.subr.bf16.mxu1 %v3858_v56 }
 0x223   :  { %2910 = vmatpush2.bf16.msra.mxu0 %v3808_v46 }
 0x224   :  { %2911 = vmatprep.subr.bf16.mxu0 %v3813_v49 }
 0x225   :  { %2951 = vmatpush2.bf16.msra.mxu1 %v3856_v45 }
 0x226   :  { %2952 = vmatprep.subr.bf16.mxu1 %v3861_v59 }
 0x227   :  { %2912 = vmatpush2.bf16.msra.mxu0 %v3811_v53  ;;  %v852_v53 = vrot.slane %v4219_v3, %v177_v10 }
 0x228   :  { %2913 = vmatprep.subr.bf16.mxu0 %v3816_v54  ;;  %v856_v54 = vrot.slane %v4219_v3, %v181_v12 }
 0x229   :  { %2953 = vmatpush2.bf16.msra.mxu1 %v3859_v63 }
 0x22a   :  { %2954 = vmatprep.subr.bf16.mxu1 %v3864_v0 }
 0x22b   :  { %2914 = vmatpush2.bf16.msra.mxu0 %v3814_v57 }
 0x22c   :  { %2915 = vmatprep.subr.bf16.mxu0 %v3819_v58 }
 0x22d   :  { %2955 = vmatpush2.bf16.msra.mxu1 %v3862_v6 }
 0x22e   :  { %2956 = vmatprep.subr.bf16.mxu1 %v3867_v23 }
 0x22f   :  { %2916 = vmatpush2.bf16.msra.mxu0 %v3817_v61 }
 0x230   :  { %2917 = vmatprep.subr.bf16.mxu0 %v3822_v48 }
 0x231   :  { %2957 = vmatpush2.bf16.msra.mxu1 %v3865_v9 }
 0x232   :  { %2958 = vmatprep.subr.bf16.mxu1 %v3870_v62 }
 0x233   :  { %2918 = vmatpush2.bf16.msra.mxu0 %v3820_v4 }
 0x234   :  { %2919 = vmatprep.subr.bf16.mxu0 %v3825_v5 }
 0x235   :  { %2959 = vmatpush2.bf16.msra.mxu1 %v3868_v29 }
 0x236   :  { %2960 = vmatprep.subr.bf16.mxu1 %v3873_v36 }
 0x237   :  { %2920 = vmatpush2.bf16.msra.mxu0 %v3823_v41 }
 0x239   :  { %2961 = vmatpush2.bf16.msra.mxu1 %v3871_v35 }
 0x23a   :  { %v2257_v15 = vpop.f32.mrf.mxu0 }
 0x23b   :  { %v2258_v17 = vadd.f32 %v2257_v15, %v2217_v43  ;;  %v2298_v18 = vpop.f32.mrf.mxu1 }
 0x23c   :  { %v2259_v19 = vpop.f32.mrf.mxu0 }
 0x23d   :  { %v2299_v20 = vadd.f32 %v2298_v18, %v2258_v17  ;;  %v2260_v21 = vadd.f32 %v2259_v19, %v2219_v16  ;;  %v2300_v22 = vpop.f32.mrf.mxu1 }
 0x23e   :  { %v2261_v24 = vpop.f32.mrf.mxu0 }
 0x23f   :  { %vm2469_vm9 = vcmp.gt.f32.partialorder %v2299_v20, 0.0  ;;  %v2473_v25 = vmul.f32 0.2, %v2299_v20  ;;  %v2301_v2 = vadd.f32 %v2300_v22, %v2260_v21  ;;  %v2302_v26 = vpop.f32.mrf.mxu1  ;;  %v2557_v22 = vld [vmem:[%s4257_s9] sm:$0x3] }
 0x240   :  { %v2262_v60 = vpop.f32.mrf.mxu0  ;;  %v2562_v23 = vrot.slane %v2557_v22, %v4140_v8  ;;  %v2566_v24 = vrot.slane %v2557_v22, %v4149_v11 }
 0x241   :  { %v2477_v47 = vsel %vm2469_vm9, %v2299_v20, %v2473_v25  ;;  %vm2470_vm10 = vcmp.gt.f32.partialorder %v2301_v2, 0.0  ;;  %v2474_v30 = vmul.f32 0.2, %v2301_v2  ;;  %v2303_v27 = vpop.f32.mrf.mxu1 }
 0x242   :  { %v2485_v31 = vmul.f32 %v2481_v52, %v2477_v47  ;;  %v2981_v27 = vld [vmem:[%s4258_s10] sm:$0x3] }
 0x243   :  { %v2478_v32 = vsel %vm2470_vm10, %v2301_v2, %v2474_v30  ;;  %v2977_v30 = vld [vmem:[#allocation8] sm:$0xff]  ;;  %v2986_v35 = vrot.slane %v2981_v27, %v4140_v8  ;;  %v2990_v36 = vrot.slane %v2981_v27, %v4149_v11 }
 0x244   :  { %v2486_v34 = vmul.f32 %v2482_v28, %v2478_v32  ;;  %v2489_v38 = vpack.c.bf16 %v2485_v31, %v2485_v31  ;;  %v2978_v31 = vld [vmem:[#allocation8 + $0x8] sm:$0xff] }
 0x246   :  { %v2490_v37 = vpack.c.bf16 %v2486_v34, %v2486_v34 }
 0x248   :  { %2921 = vmatprep.mubr.bf16.mxu0 %v2490_v37 }
 0x249   :  { %2922 = vmatmul.mubr.bf16.vlgmr.msra.gmra.mxu0 %v2489_v38 }
 0x27a   :  { %v2339_v39 = vpop.f32.mrf.mxu0 }
 0x27b   :  { %v2380_v40 = vpop.f32.mrf.mxu1  ;;  %v2340_v55 = vadd.f32 %v2339_v39, %v852_v53 }
 0x27c   :  { %v2341_v42 = vpop.f32.mrf.mxu0 }
 0x27d   :  { %v2382_v44 = vpop.f32.mrf.mxu1  ;;  %v2342_v56 = vadd.f32 %v2341_v42, %v856_v54  ;;  %v2381_v57 = vadd.f32 %v2380_v40, %v2340_v55 }
 0x27e   :  { %v2343_v46 = vpop.f32.mrf.mxu0 }
 0x27f   :  { %v2384_v49 = vpop.f32.mrf.mxu1  ;;  %v2383_v45 = vadd.f32 %v2382_v44, %v2342_v56  ;;  %v3378_v44 = vld [vmem:[#allocation2] ss:$0 sm:$0xff] }
 0x280   :  { %v2344_v50 = vpop.f32.mrf.mxu0 }
 0x281   :  { %v2385_v51 = vpop.f32.mrf.mxu1 }
 0x2ba   :  { %v2421_v58 = vpop.f32.mrf.mxu0 }
 0x2bb   :  { %v2422_v59 = vadd.f32 %v2421_v58, %v2381_v57  ;;  %v2462_v61 = vpop.f32.mrf.mxu1 }
 0x2bc   :  { %v2423_v48 = vpop.f32.mrf.mxu0 }
 0x2bd   :  { %v2463_v63 = vadd.f32 %v2462_v61, %v2422_v59  ;;  %v2424_v0 = vadd.f32 %v2423_v48, %v2383_v45  ;;  %v2464_v4 = vpop.f32.mrf.mxu1 }
 0x2be   :  { %v2425_v5 = vpop.f32.mrf.mxu0 }
 0x2bf   :  { %vm2471_vm11 = vcmp.gt.f32.partialorder %v2463_v63, 0.0  ;;  %v2475_v6 = vmul.f32 0.2, %v2463_v63  ;;  %v2465_v33 = vadd.f32 %v2464_v4, %v2424_v0  ;;  %v2466_v10 = vpop.f32.mrf.mxu1 }
 0x2c0   :  { %v2426_v1 = vpop.f32.mrf.mxu0 }
 0x2c1   :  { %v2479_v41 = vsel %vm2471_vm11, %v2463_v63, %v2475_v6  ;;  %vm2472_vm12 = vcmp.gt.f32.partialorder %v2465_v33, 0.0  ;;  %v2476_v12 = vmul.f32 0.2, %v2465_v33  ;;  %v2467_v3 = vpop.f32.mrf.mxu1 }
 0x2c2   :  { %v2487_v14 = vmul.f32 %v2483_v7, %v2479_v41 }
 0x2c3   :  { %v2480_v43 = vsel %vm2472_vm12, %v2465_v33, %v2476_v12 }
 0x2c4   :  { %v2488_v15 = vmul.f32 %v2484_v13, %v2480_v43  ;;  %v2491_v17 = vpack.c.bf16 %v2487_v14, %v2487_v14 }
 0x2c6   :  { %v2492_v16 = vpack.c.bf16 %v2488_v15, %v2488_v15 }
 0x2c8   :  { %2962 = vmatprep.mubr.bf16.mxu1 %v2492_v16 }
 0x2c9   :  { %2963 = vmatmul.mubr.bf16.vlgmr.msra.gmra.mxu1 %v2491_v17 }
 0x309   :  { %v2923_v18 = vpop.f32.mrf.mxu0 }
 0x30a   :  { %v2924_v9 = vadd.f32 %v2923_v18, %v2562_v23 }
 0x30b   :  { %v2925_v19 = vpop.f32.mrf.mxu0 }
 0x30c   :  { %v2926_v2 = vadd.f32 %v2925_v19, %v2566_v24 }
 0x30d   :  { %v2927_v20 = vpop.f32.mrf.mxu0 }
 0x30f   :  { %v2928_v21 = vpop.f32.mrf.mxu0 }
 0x389   :  { %v2964_v25 = vpop.f32.mrf.mxu1 }
 0x38a   :  { %v2965_v26 = vadd.f32 %v2964_v25, %v2924_v9 }
 0x38b   :  { %v2966_v52 = vpop.f32.mrf.mxu1 }
 0x38c   :  { %vm2971_vm13 = vcmp.gt.f32.partialorder %v2965_v26, 0.0  ;;  %v2973_v60 = vmul.f32 0.2, %v2965_v26  ;;  %v2967_v47 = vadd.f32 %v2966_v52, %v2926_v2 }
 0x38d   :  { %v2968_v28 = vpop.f32.mrf.mxu1 }
 0x38e   :  { %vm2972_vm14 = vcmp.gt.f32.partialorder %v2967_v47, 0.0  ;;  %v2974_v62 = vmul.f32 0.2, %v2967_v47  ;;  %v2975_v29 = vsel %vm2971_vm13, %v2965_v26, %v2973_v60 }
 0x38f   :  { %v2969_v32 = vpop.f32.mrf.mxu1  ;;  %v2979_v34 = vmul.f32 %v2977_v30, %v2975_v29 }
 0x390   :  { %v2976_v37 = vsel %vm2972_vm14, %v2967_v47, %v2974_v62 }
 0x391   :  { %v2980_v38 = vmul.f32 %v2978_v31, %v2976_v37  ;;  %v2993_v39 = vmul.f32 %v2986_v35, %v2979_v34 }
 0x393   :  { %v2994_v40 = vmul.f32 %v2990_v36, %v2980_v38 }
 0x395   :  { %v2995_v42 = vadd.f32 %v2994_v40, %v2993_v39 }
 0x397   :  { %2996 = vadd.xlane.f32.xlu0 %v2995_v42 }
 0x420   :  { %v2997_v46 = vpop.xlane.xlu0 %2996 }
 0x421   :  { %v3005_v49 = vadd.f32 %v3378_v44, %v2997_v46 }
 0x423   :  { %v3379_v50 = vmul.f32 -1.442695, %v3005_v49 }
 0x425   :  { %3874 = vpow2.f32 %v3379_v50 }
 0x432   :  { %v3875_v51 = vpop.eup %3874 }
 0x433   :  { %v3009_v53 = vadd.f32 1.0, %v3875_v51 }
 0x435   :  { %3876 = vrcp.f32 %v3009_v53 }
 0x442   :  { %v3877_v54 = vpop.eup %3876 }
 0x443   :  { %3013 = vst.msk [vmem:[%s4260_s12] sm:$0xff] %vm3012_vm15, %v3877_v54 }
 0x444   :  { %3018 = vsyncpa [#allocation4], 1 }
 0x445   :  { %3019 = vsyncpa [#allocation6], 1 }
 0x446   :  { %3020 = vsyncpa [#allocation9], 1 }
 0x447   :  { %3021 = vsyncpa [#allocation12], 1 }

</bundles_post_ra>
